<compile_context>
chip_gen: v5e
topology: v5e:2x2
jax: 0.10.0
libtpu: 0.0.40
codegen_flags: <defaults>
</compile_context>

<pallas_src>
import functools

import jax
import jax.numpy as jnp
from jax import lax
from jax.experimental import pallas as pl
from jax.experimental.pallas import tpu as pltpu


def _mha_kernel(q_ref, k_ref, v_ref, wq_ref, wk_ref, wv_ref, wo_ref, mask_ref,
                out_ref, att_ref, *, head, h_dim):
    x_q = q_ref[0]            # (L, D)
    x_k = k_ref[0]            # (L, D)
    x_v = v_ref[0]            # (L, D)

    # Full-width projections; Wq is pre-scaled by 1/sqrt(D) in the wrapper, so
    # the score scaling is already folded in (reference divides by sqrt(dim)).
    q = jnp.dot(x_q, wq_ref[...], preferred_element_type=jnp.float32)   # (L, D)
    k = jnp.dot(x_k, wk_ref[...], preferred_element_type=jnp.float32)   # (L, D)
    v = jnp.dot(x_v, wv_ref[...], preferred_element_type=jnp.float32)   # (L, D)

    mask = mask_ref[0, 0]     # (L, L), broadcast over heads (hoisted once)

    ctx_parts = []
    for h in range(head):                       # static unroll over heads
        sl = slice(h * h_dim, (h + 1) * h_dim)  # lane-aligned (h_dim = 128)
        qh = q[:, sl]
        kh = k[:, sl]
        vh = v[:, sl]

        # Scores without materializing kh.T: contract last dims of both operands.
        s = lax.dot_general(qh, kh, (((1,), (1,)), ((), ())),
                            preferred_element_type=jnp.float32)         # (L, L)
        s = s + mask

        # Numerically-stable softmax over the last axis.
        s = s - jnp.max(s, axis=-1, keepdims=True)
        p = jnp.exp(s)
        p = p * pl.reciprocal(jnp.sum(p, axis=-1, keepdims=True), approx=True)

        # TODO(synk): nn.Dropout(drop_rate) on att_weight is identity in eval
        # mode; no dropout applied here.
        att_ref[0, h] = p.astype(att_ref.dtype)

        ctx_parts.append(jnp.dot(p, vh, preferred_element_type=jnp.float32))

    # Concatenate per-head contexts (lane-aligned, cheap) and do ONE full-width
    # output projection so the MXU sees a D-wide contraction.
    ctx = jnp.concatenate(ctx_parts, axis=-1)                           # (L, D)
    out_ref[0] = jnp.dot(ctx, wo_ref[...],
                         preferred_element_type=jnp.float32).astype(out_ref.dtype)


def multi_head_attention(query, key, value, att_mask, wq, wk, wv, wo, *, head):
    """Pallas MHA.  wq/wk/wv/wo are PyTorch-convention (out, in) Linear weights."""
    B, L, D = query.shape
    h_dim = D // head
    scale = float(D) ** 0.5

    # Pre-transpose so that y = x @ w_t  (torch: y = x @ W.T); fold 1/scale
    # into Wq once on the host side so the kernel never divides.
    wq_t = (wq.T / scale).astype(query.dtype)
    wk_t = wk.T
    wv_t = wv.T
    wo_t = wo.T

    kernel = functools.partial(_mha_kernel, head=head, h_dim=h_dim)

    grid_spec = pltpu.PrefetchScalarGridSpec(
        num_scalar_prefetch=0,
        grid=(B,),
        in_specs=[
            pl.BlockSpec((1, L, D), lambda b: (b, 0, 0)),        # query
            pl.BlockSpec((1, L, D), lambda b: (b, 0, 0)),        # key
            pl.BlockSpec((1, L, D), lambda b: (b, 0, 0)),        # value
            pl.BlockSpec((D, D), lambda b: (0, 0)),              # Wq^T/scale (resident)
            pl.BlockSpec((D, D), lambda b: (0, 0)),              # Wk^T (resident)
            pl.BlockSpec((D, D), lambda b: (0, 0)),              # Wv^T (resident)
            pl.BlockSpec((D, D), lambda b: (0, 0)),              # Wo^T (resident)
            pl.BlockSpec((1, 1, L, L), lambda b: (b, 0, 0, 0)),  # mask
        ],
        out_specs=[
            pl.BlockSpec((1, L, D), lambda b: (b, 0, 0)),            # enc_out
            pl.BlockSpec((1, head, L, L), lambda b: (b, 0, 0, 0)),   # att_weight
        ],
    )

    out_shapes = (
        jax.ShapeDtypeStruct((B, L, D), query.dtype),
        jax.ShapeDtypeStruct((B, head, L, L), jnp.float32),
    )

    enc_out, att_weight = pl.pallas_call(
        kernel,
        out_shape=out_shapes,
        grid_spec=grid_spec,
        compiler_params=pltpu.CompilerParams(
            dimension_semantics=("parallel",)),   # v7x: both TCs take batches
    )(query, key, value, wq_t, wk_t, wv_t, wo_t, att_mask)
    return enc_out, att_weight


def _reference(query, key, value, att_mask, wq, wk, wv, wo, *, head):
    """Pure-JAX reference of the PyTorch forward (eval mode)."""
    B, L, D = query.shape
    h_dim = D // head
    scale = float(D) ** 0.5
    q = (query @ wq.T).reshape(B, L, head, h_dim).transpose(0, 2, 1, 3)
    k = (key @ wk.T).reshape(B, L, head, h_dim).transpose(0, 2, 1, 3)
    v = (value @ wv.T).reshape(B, L, head, h_dim).transpose(0, 2, 1, 3)
    att = jnp.einsum("bhqd,bhkd->bhqk", q, k) / scale + att_mask
    att = jax.nn.softmax(att, axis=-1)
    enc = jnp.einsum("bhqk,bhkd->bhqd", att, v)
    enc = enc.transpose(0, 2, 1, 3).reshape(B, L, D)
    enc = enc @ wo.T
    return enc, att


if __name__ == "__main__":
    # Small shapes: dim=256, head=2 (head_dim=128, lane-aligned), seq=8, batch=2.
    B, L, D, HEAD = 2, 8, 256, 2

    key0 = jax.random.PRNGKey(0)
    ks = jax.random.split(key0, 8)
    query = jax.random.normal(ks[0], (B, L, D), jnp.float32)
    key_in = jax.random.normal(ks[1], (B, L, D), jnp.float32)
    value = jax.random.normal(ks[2], (B, L, D), jnp.float32)
    # additive attention mask, broadcast over heads (padding-mask style)
    att_mask = jnp.where(
        jax.random.uniform(ks[3], (B, 1, L, L)) > 0.2, 0.0, -1e9
    ).astype(jnp.float32)

    winit = 1.0 / (D ** 0.5)
    wq = jax.random.uniform(ks[4], (D, D), jnp.float32, -winit, winit)
    wk = jax.random.uniform(ks[5], (D, D), jnp.float32, -winit, winit)
    wv = jax.random.uniform(ks[6], (D, D), jnp.float32, -winit, winit)
    wo = jax.random.uniform(ks[7], (D, D), jnp.float32, -winit, winit)

    enc_out, att_weight = multi_head_attention(
        query, key_in, value, att_mask, wq, wk, wv, wo, head=HEAD)
    jax.block_until_ready((enc_out, att_weight))

    ref_enc, ref_att = _reference(
        query, key_in, value, att_mask, wq, wk, wv, wo, head=HEAD)
    assert enc_out.shape == (B, L, D)
    assert att_weight.shape == (B, HEAD, L, L)
    # Tolerances relaxed slightly vs the exact-f32 version because the softmax
    # denominator uses the EUP approximate reciprocal.
    assert jnp.allclose(enc_out, ref_enc, atol=5e-3, rtol=5e-3)
    assert jnp.allclose(att_weight, ref_att, atol=1e-3, rtol=1e-3)

    print("KERNEL_OK")
</pallas_src>

<mosaic_0001>
module attributes {stable_mosaic.version = 11 : i64} {
  func.func @_mha_kernel(%arg0: i32, %arg1: memref<1x8x256xf32, #tpu.memory_space<vmem>>, %arg2: memref<1x8x256xf32, #tpu.memory_space<vmem>>, %arg3: memref<1x8x256xf32, #tpu.memory_space<vmem>>, %arg4: memref<256x256xf32, #tpu.memory_space<vmem>>, %arg5: memref<256x256xf32, #tpu.memory_space<vmem>>, %arg6: memref<256x256xf32, #tpu.memory_space<vmem>>, %arg7: memref<256x256xf32, #tpu.memory_space<vmem>>, %arg8: memref<1x1x8x8xf32, #tpu.memory_space<vmem>>, %arg9: memref<1x8x256xf32, #tpu.memory_space<vmem>>, %arg10: memref<1x2x8x8xf32, #tpu.memory_space<vmem>>) attributes {dimension_semantics = [#tpu.dimension_semantics<parallel>], iteration_bounds = array<i64: 2>, scalar_prefetch = 0 : i64, scratch_operands = 0 : i64, tpu.core_type = #tpu.core_type<tc>, window_params = [{transform_indices = @transform_0, window_bounds = array<i64: 1, 8, 256>}, {transform_indices = @transform_1, window_bounds = array<i64: 1, 8, 256>}, {transform_indices = @transform_2, window_bounds = array<i64: 1, 8, 256>}, {pipeline_mode = #tpu.pipeline_mode<synchronous>, transform_indices = @transform_3, window_bounds = array<i64: 256, 256>}, {pipeline_mode = #tpu.pipeline_mode<synchronous>, transform_indices = @transform_4, window_bounds = array<i64: 256, 256>}, {pipeline_mode = #tpu.pipeline_mode<synchronous>, transform_indices = @transform_5, window_bounds = array<i64: 256, 256>}, {pipeline_mode = #tpu.pipeline_mode<synchronous>, transform_indices = @transform_6, window_bounds = array<i64: 256, 256>}, {transform_indices = @transform_7, window_bounds = array<i64: 1, 1, 8, 8>}, {transform_indices = @transform_8, window_bounds = array<i64: 1, 8, 256>}, {transform_indices = @transform_9, window_bounds = array<i64: 1, 2, 8, 8>}]} {
    %c0 = arith.constant 0 : index
    %c0_0 = arith.constant 0 : index
    %c0_1 = arith.constant 0 : index
    %0 = vector.load %arg1[%c0, %c0_0, %c0_1] : memref<1x8x256xf32, #tpu.memory_space<vmem>>, vector<1x8x256xf32>
    %1 = vector.shape_cast %0 : vector<1x8x256xf32> to vector<8x256xf32>
    %c0_2 = arith.constant 0 : index
    %c0_3 = arith.constant 0 : index
    %c0_4 = arith.constant 0 : index
    %2 = vector.load %arg2[%c0_2, %c0_3, %c0_4] : memref<1x8x256xf32, #tpu.memory_space<vmem>>, vector<1x8x256xf32>
    %3 = vector.shape_cast %2 : vector<1x8x256xf32> to vector<8x256xf32>
    %c0_5 = arith.constant 0 : index
    %c0_6 = arith.constant 0 : index
    %c0_7 = arith.constant 0 : index
    %4 = vector.load %arg3[%c0_5, %c0_6, %c0_7] : memref<1x8x256xf32, #tpu.memory_space<vmem>>, vector<1x8x256xf32>
    %5 = vector.shape_cast %4 : vector<1x8x256xf32> to vector<8x256xf32>
    %c0_8 = arith.constant 0 : index
    %c0_9 = arith.constant 0 : index
    %6 = vector.load %arg4[%c0_8, %c0_9] : memref<256x256xf32, #tpu.memory_space<vmem>>, vector<256x256xf32>
    %cst = arith.constant dense<0.000000e+00> : vector<8x256xf32>
    %7 = tpu.matmul %1, %6, %cst {dimension_numbers = #tpu.dot_dimension_numbers<[1], [0], [0], [1], [0, 0, 1, 1], [], []>} : vector<8x256xf32>, vector<256x256xf32>, vector<8x256xf32> -> vector<8x256xf32>
    %c0_10 = arith.constant 0 : index
    %c0_11 = arith.constant 0 : index
    %8 = vector.load %arg5[%c0_10, %c0_11] : memref<256x256xf32, #tpu.memory_space<vmem>>, vector<256x256xf32>
    %cst_12 = arith.constant dense<0.000000e+00> : vector<8x256xf32>
    %9 = tpu.matmul %3, %8, %cst_12 {dimension_numbers = #tpu.dot_dimension_numbers<[1], [0], [0], [1], [0, 0, 1, 1], [], []>} : vector<8x256xf32>, vector<256x256xf32>, vector<8x256xf32> -> vector<8x256xf32>
    %c0_13 = arith.constant 0 : index
    %c0_14 = arith.constant 0 : index
    %10 = vector.load %arg6[%c0_13, %c0_14] : memref<256x256xf32, #tpu.memory_space<vmem>>, vector<256x256xf32>
    %cst_15 = arith.constant dense<0.000000e+00> : vector<8x256xf32>
    %11 = tpu.matmul %5, %10, %cst_15 {dimension_numbers = #tpu.dot_dimension_numbers<[1], [0], [0], [1], [0, 0, 1, 1], [], []>} : vector<8x256xf32>, vector<256x256xf32>, vector<8x256xf32> -> vector<8x256xf32>
    %c0_16 = arith.constant 0 : index
    %c0_17 = arith.constant 0 : index
    %c0_18 = arith.constant 0 : index
    %c0_19 = arith.constant 0 : index
    %12 = vector.load %arg8[%c0_16, %c0_17, %c0_18, %c0_19] : memref<1x1x8x8xf32, #tpu.memory_space<vmem>>, vector<1x1x8x8xf32>
    %13 = vector.shape_cast %12 : vector<1x1x8x8xf32> to vector<8x8xf32>
    %14 = vector.extract_strided_slice %7 {offsets = [0, 0], sizes = [8, 128], strides = [1, 1]} : vector<8x256xf32> to vector<8x128xf32>
    %15 = vector.extract_strided_slice %9 {offsets = [0, 0], sizes = [8, 128], strides = [1, 1]} : vector<8x256xf32> to vector<8x128xf32>
    %16 = vector.extract_strided_slice %11 {offsets = [0, 0], sizes = [8, 128], strides = [1, 1]} : vector<8x256xf32> to vector<8x128xf32>
    %cst_20 = arith.constant dense<0.000000e+00> : vector<8x8xf32>
    %17 = tpu.matmul %14, %15, %cst_20 {dimension_numbers = #tpu.dot_dimension_numbers<[1], [1], [0], [0], [0, 0, 1, 0], [], []>} : vector<8x128xf32>, vector<8x128xf32>, vector<8x8xf32> -> vector<8x8xf32>
    %18 = arith.addf %17, %13 : vector<8x8xf32>
    %cst_21 = arith.constant dense<0xFF800000> : vector<8xf32>
    %19 = vector.multi_reduction <maximumf>, %18, %cst_21 [1] : vector<8x8xf32> to vector<8xf32>
    %20 = vector.shape_cast %19 : vector<8xf32> to vector<8x1xf32>
    %21 = vector.broadcast %20 : vector<8x1xf32> to vector<8x8xf32>
    %22 = arith.subf %18, %21 : vector<8x8xf32>
    %23 = math.exp %22 : vector<8x8xf32>
    %cst_22 = arith.constant dense<0.000000e+00> : vector<8xf32>
    %24 = vector.multi_reduction <add>, %23, %cst_22 [1] : vector<8x8xf32> to vector<8xf32>
    %25 = vector.shape_cast %24 : vector<8xf32> to vector<8x1xf32>
    %26 = tpu.reciprocal %25 {approx = true} : vector<8x1xf32> -> vector<8x1xf32>
    %27 = vector.broadcast %26 : vector<8x1xf32> to vector<8x8xf32>
    %28 = arith.mulf %23, %27 : vector<8x8xf32>
    %c0_23 = arith.constant 0 : index
    %c0_24 = arith.constant 0 : index
    %c0_25 = arith.constant 0 : index
    %c0_26 = arith.constant 0 : index
    %29 = vector.load %arg10[%c0_23, %c0_24, %c0_25, %c0_26] : memref<1x2x8x8xf32, #tpu.memory_space<vmem>>, vector<1x1x8x8xf32>
    %30 = vector.shape_cast %29 : vector<1x1x8x8xf32> to vector<8x8xf32>
    %31 = vector.shape_cast %28 : vector<8x8xf32> to vector<1x1x8x8xf32>
    tpu.vector_store %arg10[%c0_23, %c0_24, %c0_25, %c0_26], %31 {strides = array<i32>} : memref<1x2x8x8xf32, #tpu.memory_space<vmem>>, vector<1x1x8x8xf32>,
    %cst_27 = arith.constant dense<0.000000e+00> : vector<8x128xf32>
    %32 = tpu.matmul %28, %16, %cst_27 {dimension_numbers = #tpu.dot_dimension_numbers<[1], [0], [0], [1], [0, 0, 1, 1], [], []>} : vector<8x8xf32>, vector<8x128xf32>, vector<8x128xf32> -> vector<8x128xf32>
    %33 = vector.extract_strided_slice %7 {offsets = [0, 128], sizes = [8, 128], strides = [1, 1]} : vector<8x256xf32> to vector<8x128xf32>
    %34 = vector.extract_strided_slice %9 {offsets = [0, 128], sizes = [8, 128], strides = [1, 1]} : vector<8x256xf32> to vector<8x128xf32>
    %35 = vector.extract_strided_slice %11 {offsets = [0, 128], sizes = [8, 128], strides = [1, 1]} : vector<8x256xf32> to vector<8x128xf32>
    %cst_28 = arith.constant dense<0.000000e+00> : vector<8x8xf32>
    %36 = tpu.matmul %33, %34, %cst_28 {dimension_numbers = #tpu.dot_dimension_numbers<[1], [1], [0], [0], [0, 0, 1, 0], [], []>} : vector<8x128xf32>, vector<8x128xf32>, vector<8x8xf32> -> vector<8x8xf32>
    %37 = arith.addf %36, %13 : vector<8x8xf32>
    %cst_29 = arith.constant dense<0xFF800000> : vector<8xf32>
    %38 = vector.multi_reduction <maximumf>, %37, %cst_29 [1] : vector<8x8xf32> to vector<8xf32>
    %39 = vector.shape_cast %38 : vector<8xf32> to vector<8x1xf32>
    %40 = vector.broadcast %39 : vector<8x1xf32> to vector<8x8xf32>
    %41 = arith.subf %37, %40 : vector<8x8xf32>
    %42 = math.exp %41 : vector<8x8xf32>
    %cst_30 = arith.constant dense<0.000000e+00> : vector<8xf32>
    %43 = vector.multi_reduction <add>, %42, %cst_30 [1] : vector<8x8xf32> to vector<8xf32>
    %44 = vector.shape_cast %43 : vector<8xf32> to vector<8x1xf32>
    %45 = tpu.reciprocal %44 {approx = true} : vector<8x1xf32> -> vector<8x1xf32>
    %46 = vector.broadcast %45 : vector<8x1xf32> to vector<8x8xf32>
    %47 = arith.mulf %42, %46 : vector<8x8xf32>
    %c0_31 = arith.constant 0 : index
    %c1 = arith.constant 1 : index
    %c0_32 = arith.constant 0 : index
    %c0_33 = arith.constant 0 : index
    %48 = vector.load %arg10[%c0_31, %c1, %c0_32, %c0_33] : memref<1x2x8x8xf32, #tpu.memory_space<vmem>>, vector<1x1x8x8xf32>
    %49 = vector.shape_cast %48 : vector<1x1x8x8xf32> to vector<8x8xf32>
    %50 = vector.shape_cast %47 : vector<8x8xf32> to vector<1x1x8x8xf32>
    tpu.vector_store %arg10[%c0_31, %c1, %c0_32, %c0_33], %50 {strides = array<i32>} : memref<1x2x8x8xf32, #tpu.memory_space<vmem>>, vector<1x1x8x8xf32>,
    %cst_34 = arith.constant dense<0.000000e+00> : vector<8x128xf32>
    %51 = tpu.matmul %47, %35, %cst_34 {dimension_numbers = #tpu.dot_dimension_numbers<[1], [0], [0], [1], [0, 0, 1, 1], [], []>} : vector<8x8xf32>, vector<8x128xf32>, vector<8x128xf32> -> vector<8x128xf32>
    %52 = tpu.concatenate %32, %51 in 1 : vector<8x128xf32>, vector<8x128xf32> -> vector<8x256xf32>
    %c0_35 = arith.constant 0 : index
    %c0_36 = arith.constant 0 : index
    %53 = vector.load %arg7[%c0_35, %c0_36] : memref<256x256xf32, #tpu.memory_space<vmem>>, vector<256x256xf32>
    %cst_37 = arith.constant dense<0.000000e+00> : vector<8x256xf32>
    %54 = tpu.matmul %52, %53, %cst_37 {dimension_numbers = #tpu.dot_dimension_numbers<[1], [0], [0], [1], [0, 0, 1, 1], [], []>} : vector<8x256xf32>, vector<256x256xf32>, vector<8x256xf32> -> vector<8x256xf32>
    %c0_38 = arith.constant 0 : index
    %c0_39 = arith.constant 0 : index
    %c0_40 = arith.constant 0 : index
    %55 = vector.load %arg9[%c0_38, %c0_39, %c0_40] : memref<1x8x256xf32, #tpu.memory_space<vmem>>, vector<1x8x256xf32>
    %56 = vector.shape_cast %55 : vector<1x8x256xf32> to vector<8x256xf32>
    %57 = vector.shape_cast %54 : vector<8x256xf32> to vector<1x8x256xf32>
    tpu.vector_store %arg9[%c0_38, %c0_39, %c0_40], %57 {strides = array<i32>} : memref<1x8x256xf32, #tpu.memory_space<vmem>>, vector<1x8x256xf32>,
    return
  }
  func.func @transform_0(%arg0: i32) -> (i32, i32, i32) {
    %c0_i32 = arith.constant 0 : i32
    %c0_i32_0 = arith.constant 0 : i32
    %c0_i32_1 = arith.constant 0 : i32
    return %arg0, %c0_i32, %c0_i32_0 : i32, i32, i32
  }
  func.func @transform_1(%arg0: i32) -> (i32, i32, i32) {
    %c0_i32 = arith.constant 0 : i32
    %c0_i32_0 = arith.constant 0 : i32
    %c0_i32_1 = arith.constant 0 : i32
    return %arg0, %c0_i32, %c0_i32_0 : i32, i32, i32
  }
  func.func @transform_2(%arg0: i32) -> (i32, i32, i32) {
    %c0_i32 = arith.constant 0 : i32
    %c0_i32_0 = arith.constant 0 : i32
    %c0_i32_1 = arith.constant 0 : i32
    return %arg0, %c0_i32, %c0_i32_0 : i32, i32, i32
  }
  func.func @transform_3(%arg0: i32) -> (i32, i32) {
    %c0_i32 = arith.constant 0 : i32
    %c0_i32_0 = arith.constant 0 : i32
    %c0_i32_1 = arith.constant 0 : i32
    return %c0_i32, %c0_i32_0 : i32, i32
  }
  func.func @transform_4(%arg0: i32) -> (i32, i32) {
    %c0_i32 = arith.constant 0 : i32
    %c0_i32_0 = arith.constant 0 : i32
    %c0_i32_1 = arith.constant 0 : i32
    return %c0_i32, %c0_i32_0 : i32, i32
  }
  func.func @transform_5(%arg0: i32) -> (i32, i32) {
    %c0_i32 = arith.constant 0 : i32
    %c0_i32_0 = arith.constant 0 : i32
    %c0_i32_1 = arith.constant 0 : i32
    return %c0_i32, %c0_i32_0 : i32, i32
  }
  func.func @transform_6(%arg0: i32) -> (i32, i32) {
    %c0_i32 = arith.constant 0 : i32
    %c0_i32_0 = arith.constant 0 : i32
    %c0_i32_1 = arith.constant 0 : i32
    return %c0_i32, %c0_i32_0 : i32, i32
  }
  func.func @transform_7(%arg0: i32) -> (i32, i32, i32, i32) {
    %c0_i32 = arith.constant 0 : i32
    %c0_i32_0 = arith.constant 0 : i32
    %c0_i32_1 = arith.constant 0 : i32
    %c0_i32_2 = arith.constant 0 : i32
    return %arg0, %c0_i32, %c0_i32_0, %c0_i32_1 : i32, i32, i32, i32
  }
  func.func @transform_8(%arg0: i32) -> (i32, i32, i32) {
    %c0_i32 = arith.constant 0 : i32
    %c0_i32_0 = arith.constant 0 : i32
    %c0_i32_1 = arith.constant 0 : i32
    return %arg0, %c0_i32, %c0_i32_0 : i32, i32, i32
  }
  func.func @transform_9(%arg0: i32) -> (i32, i32, i32, i32) {
    %c0_i32 = arith.constant 0 : i32
    %c0_i32_0 = arith.constant 0 : i32
    %c0_i32_1 = arith.constant 0 : i32
    %c0_i32_2 = arith.constant 0 : i32
    return %arg0, %c0_i32, %c0_i32_0, %c0_i32_1 : i32, i32, i32, i32
  }
}

</mosaic_0001>

<bundles_post_ra>
// kernel: tpu_custom_call.1
= control target key start
LH: loop header
LB: loop body
LE: loop exit
PB: predicated region body
PF: predicated region fallthrough
CT: control target
= control target key end

     0   :  { %s2375_s0 = inlined_call_operand.hbm [shape: f32[2,8,256], index: 0, kind: input, shape index: {}]   ;;  %s2376_s1 = inlined_call_operand.hbm [shape: f32[2,8,256], index: 1, kind: input, shape index: {}]   ;;  %s2377_s2 = inlined_call_operand.hbm [shape: f32[2,8,256], index: 2, kind: input, shape index: {}]   ;;  %s2378_s3 = inlined_call_operand.hbm [shape: f32[256,256], index: 3, kind: input, shape index: {}]   ;;  %s2379_s4 = inlined_call_operand.hbm [shape: f32[256,256], index: 4, kind: input, shape index: {}]   ;;  %s2380_s5 = inlined_call_operand.hbm [shape: f32[256,256], index: 5, kind: input, shape index: {}]   ;;  %s2381_s6 = inlined_call_operand.hbm [shape: f32[256,256], index: 6, kind: input, shape index: {}]   ;;  %s2382_s7 = inlined_call_operand.hbm [shape: f32[2,1,8,8], index: 7, kind: input, shape index: {}]   ;;  %s2383_s8 = inlined_call_operand.hbm [shape: f32[2,8,256], index: 8, kind: output, shape index: {0}]   ;;  %s2384_s9 = inlined_call_operand.hbm [shape: f32[2,2,8,8], index: 9, kind: output, shape index: {1}]  }
   0x1   :  { %2395 = sst [smem:[#allocation31_spill]] %s2376_s1 }
   0x2   :  { %2396 = sst [smem:[#allocation32_spill]] %s2378_s3 }
   0x3   :  { %2397 = sst [smem:[#allocation33_spill]] %s2379_s4 }
   0x4   :  { %2398 = sst [smem:[#allocation34_spill]] %s2380_s5 }
   0x5   :  { %2399 = sst [smem:[#allocation35_spill]] %s2381_s6 }
   0x6   :  { %15 = vsyncpa [#allocation3], 0 }
   0x7   :  { %17 = vsyncpa [#allocation3 + $0x1], 0 }
   0x8   :  { %18 = vsyncpa [#allocation6], 0 }
   0x9   :  { %20 = vsyncpa [#allocation6 + $0x1], 0 }
   0xa   :  { %21 = vsyncpa [#allocation9], 0 }
   0xb   :  { %22 = vsyncpa [#allocation12], 0 }
   0xc   :  { %23 = vsyncpa [#allocation15], 0 }
   0xd   :  { %25 = vsyncpa [#allocation15 + $0x1], 0 }
   0xe   :  { %26 = vsyncpa [#allocation4], 0 }
   0xf   :  { %28 = vsyncpa [#allocation4 + $0x1], 0 }
  0x10   :  { %29 = vsyncpa [#allocation18], 0 }
  0x11   :  { %31 = vsyncpa [#allocation18 + $0x1], 0  ;;  %s2065_s30 = smov 0   ;;  %s2067_s10 = smov 0  }
  0x12   :  { %s2069_s11 = smov 0   ;;  %s2071_s12 = smov 0  }
  0x13 LB: > { %2400 = sst [smem:[#allocation26_spill]] %s1993_s30  ;;  %s2086_s13 = sadd.s32 4294967295, %s2005_s12   ;;  %s2005_s12 = sphi %s2071_s12, %s2425_s12   ;;  %s2001_s11 = sphi %s2069_s11, %s2427_s11   ;;  %s1997_s10 = sphi %s2067_s10, %s2429_s10   ;;  %s1993_s30 = sphi %s2065_s30, %s2428_s30  }
  0x14   : > { %2401 = sst [smem:[#allocation27_spill]] %s2001_s11  ;;  %s1487_s14 = sadd.s32 4294967294, %s2005_s12  }
  0x15   : > { %p57_p0 = scmp.ne.s32.totalorder %s1997_s10, %s1993_s30  ;;  %p2393_p1 = scmp.eq.s32.totalorder %s2086_s13, 0 }
  0x16   : > { %p243_p2 = scmp.eq.s32.totalorder %s2086_s13, 1  ;;  %p249_p3 = scmp.eq.s32.totalorder %s1487_s14, 1 }
  0x17   : > { %p2095_p4 = por %p2393_p1, %p57_p0  ;;  %p1488_p5 = scmp.ge.s32.totalorder %s2005_s12, 1 }
  0x18   : > { %p2100_p6 = por %p249_p3, %p57_p0  ;;  %p282_p7 = scmp.lt.s32.totalorder %s2005_s12, 3 }
  0x19   : > { %s2405_s3 = sld [smem:[#allocation32_spill]]  ;;  %s2007_s21 = smov [#allocation8]  }
  0x1a   : > { %s2403_s16 = scalar_select %p2100_p6, 1, 0 }
  0x1b   : > { %p2108_p8 = pnand %p1488_p5, %p282_p7  ;;  %s295_s22 = sshll.u32 %s2007_s21, 4  ;;  %s296_s22 = int_to_ptr.vmem [resolvable:$true] %s295_s22 }
  0x1c   : > { %2404 = sst [smem:[#allocation28_spill]] %s2403_s16  ;;  %s2385_s27 = smov 256  }
  0x1d   : > { %p1560_p9 = pneg %p2108_p8  ;;  %s2408_s5 = sld [smem:[#allocation34_spill]] }
  0x1e   : > { %s2387_s28 = smov 16   ;;  %s2010_s29 = smov [#allocation11]  }
  0x1f   : > { %s293_s19 = sshll.u32 %s2405_s3, 4  ;;  %p2116_p10 = pnand %p1560_p9, %p2393_p1  ;;  %s294_s19 = int_to_ptr.hbm [resolvable:$true] %s293_s19 }
  0x20   : > { %s323_s14 = sshll.u32 %s2010_s29, 4  ;;  %s2135_s17 = sadd.s32 1, %s2005_s12   ;;  %s324_s14 = int_to_ptr.vmem [resolvable:$true] %s323_s14 }
  0x21   : > { %1563 = dma.hbm_to_vmem [thread:$0]  (!%p2116_p10), %s294_s19, 8192, %s296_s22, [#allocation9], %s2385_s27, %s2385_s27, %s2387_s28  }
  0x22   : > { %2409 = sst [smem:[#allocation29_spill]] %s2135_s17  ;;  %s44_s18 = sadd.s32 1, %s2001_s11 }
  0x23   : > { %s321_s26 = sshll.u32 %s2408_s5, 4  ;;  %s41_s21 = ssub.s32 %s2005_s12, %s2135_s17  ;;  %s322_s26 = int_to_ptr.hbm [resolvable:$true] %s321_s26 }
  0x24   : > { %1569 = dma.hbm_to_vmem [thread:$0]  (!%p2116_p10), %s322_s26, 8192, %s324_s14, [#allocation12], %s2385_s27, %s2385_s27, %s2387_s28  }
  0x25   : > { %p51_p12 = scmp.ne.s32.totalorder %s2001_s11, %s1997_s10  ;;  %p42_p13 = scmp.eq.s32.totalorder %s41_s21, 0 }
  0x26   : > { %p52_p0 = scmp.eq.s32.totalorder %s2005_s12, 0  ;;  %p1597_p5 = scmp.lt.s32.totalorder %s2005_s12, 2 }
  0x27   : > { %p2145_p3 = por %p243_p2, %p51_p12  ;;  %s2154_s24 = sand.u32 1, %s2001_s11  }
  0x28   : > { %s2151_s22 = scalar_select %p42_p13, %s2001_s11, %s44_s18  }
  0x29   : > { %p53_p7 = por %p52_p0, %p51_p12  ;;  %s2157_s25 = sshll.u32 %s2154_s24, 4 }
  0x2a   : > { %2411 = sst [smem:[#allocation30_spill]] %s2151_s22  ;;  %s2160_s26 = sshll.u32 %s2005_s12, 4 }
  0x2b   : > { %p2162_p9 = pnand %p1597_p5, %p53_p7  ;;  %s371_s14 = sand.u32 1, %s2005_s12  }
  0x2c   : > { %s2413_s1 = sld [smem:[#allocation31_spill]]  ;;  %s375_s3 = scalar_lea.vmem [#allocation5], %s2157_s25 }
  0x2d   : > { %s384_s5 = sshll.u32 %s375_s3, 4  ;;  %s2172_s22 = scalar_lea.sflag [#allocation6], %s371_s14  ;;  %s385_s5 = int_to_ptr.vmem [resolvable:$true] %s384_s5 }
  0x2e   : > { %p1715_p12 = pneg %p2162_p9 }
  0x32   : > { %s380_s27 = scalar_lea.hbm %s2413_s1, %s2160_s26 }
  0x33   : > { %s382_s28 = sshll.u32 %s380_s27, 4  ;;  %s1718_s27 = scalar_lea.hbm %s2413_s1, 32  ;;  %s383_s28 = int_to_ptr.hbm [resolvable:$true] %s382_s28 }
  0x34   : > { %s1711_s11 = sshra.s32 %s383_s28, 4  ;;  %s1712_s11 = int_to_ptr.hbm [resolvable:$true] %s1711_s11 }
  0x35   : > { %s1713_s17 = scalar_lea.hbm %s1712_s11, 16  ;;  %p1719_p5 = scmp.lt.s32.totalorder %s1712_s11, %s2413_s1 }
  0x36   : > { %p1714_p2 = scmp.ne.s32.totalorder %s1712_s11, %s1713_s17  ;;  %p1720_p7 = scmp.lt.s32.totalorder %s1718_s27, %s1713_s17 }
  0x38   : > { %p1716_p13 = pnand %p1715_p12, %p1714_p2  ;;  %p1721_p11 = por %p1720_p7, %p1719_p5 }
  0x3a   : > { %p1717_p0 = pneg %p1716_p13 }
  0x3c   : > { %p1722_p1 = pnand %p1721_p11, %p1717_p0 }
  0x3e   : > { %1725 = shalt.err (!%p1722_p1)
}
  0x3f   : > { %1579 = dma.hbm_to_vmem [thread:$0]  (!%p2162_p9), %s383_s28, 256, %s385_s5, %s2172_s22  }
  0x40   : > { %s2414_s4 = sld [smem:[#allocation33_spill]]  ;;  %s2011_s21 = smov [#allocation10]  }
  0x41   : > { %s309_s11 = sshll.u32 %s2011_s21, 4  ;;  %s2415_s6 = sld [smem:[#allocation35_spill]]  ;;  %s310_s11 = int_to_ptr.vmem [resolvable:$true] %s309_s11 }
  0x42   : > { %s2416_s3 = smov 16   ;;  %s2417_s1 = smov 256  }
  0x43   : > { %s2012_s5 = smov [#allocation13]   ;;  %s360_s21 = scalar_lea.hbm %s2375_s0, %s2160_s26 }
  0x44   : > { %s337_s28 = sshll.u32 %s2012_s5, 4  ;;  %s355_s17 = scalar_lea.vmem [#allocation2], %s2157_s25  ;;  %s338_s28 = int_to_ptr.vmem [resolvable:$true] %s337_s28 }
  0x45   : > { %s364_s27 = sshll.u32 %s355_s17, 4  ;;  %s365_s27 = int_to_ptr.vmem [resolvable:$true] %s364_s27 }
  0x46   : > { %s307_s16 = sshll.u32 %s2414_s4, 4  ;;  %s362_s4 = sshll.u32 %s360_s21, 4  ;;  %s308_s16 = int_to_ptr.hbm [resolvable:$true] %s307_s16  ;;  %s363_s4 = int_to_ptr.hbm [resolvable:$true] %s362_s4 }
  0x47   : > { %s335_s18 = sshll.u32 %s2415_s6, 4  ;;  %s336_s18 = int_to_ptr.hbm [resolvable:$true] %s335_s18 }
  0x48   : > { %1566 = dma.hbm_to_vmem [thread:$0]  (!%p2116_p10), %s308_s16, 8192, %s310_s11, [#allocation9], %s2417_s1, %s2417_s1, %s2416_s3  }
  0x49   : > { %1572 = dma.hbm_to_vmem [thread:$0]  (!%p2116_p10), %s336_s18, 8192, %s338_s28, [#allocation12], %s2417_s1, %s2417_s1, %s2416_s3  }
  0x4a   : > { %s352_s16 = scalar_lea.sflag [#allocation3], %s2154_s24  ;;  %s1801_s11 = sshra.s32 %s363_s4, 4  ;;  %s1802_s11 = int_to_ptr.hbm [resolvable:$true] %s1801_s11 }
  0x4b   : > { %s1803_s6 = scalar_lea.hbm %s1802_s11, 16  ;;  %s1808_s18 = scalar_lea.hbm %s2375_s0, 32 }
  0x4c   : > { %p1804_p1 = scmp.ne.s32.totalorder %s1802_s11, %s1803_s6  ;;  %p1809_p10 = scmp.lt.s32.totalorder %s1802_s11, %s2375_s0 }
  0x4d   : > { %p1810_p13 = scmp.lt.s32.totalorder %s1808_s18, %s1803_s6 }
  0x4e   : > { %p1806_p11 = pnand %p1804_p1, %p1715_p12 }
  0x4f   : > { %p1811_p0 = por %p1810_p13, %p1809_p10 }
  0x50   : > { %p1807_p2 = pneg %p1806_p11 }
  0x52   : > { %p1812_p5 = pnand %p1811_p0, %p1807_p2 }
  0x54   : > { %1815 = shalt.err (!%p1812_p5)
}
  0x55   : > { %1576 = dma.hbm_to_vmem [thread:$0]  (!%p2162_p9), %s363_s4, 256, %s365_s27, %s352_s16  }
  0x56   : > { %s400_s14 = scalar_lea.hbm %s2377_s2, %s2160_s26  ;;  %s395_s21 = scalar_lea.vmem [#allocation7], %s2157_s25 }
  0x57   : > { %s404_s17 = sshll.u32 %s395_s21, 4  ;;  %s402_s23 = sshll.u32 %s400_s14, 4  ;;  %s405_s17 = int_to_ptr.vmem [resolvable:$true] %s404_s17  ;;  %s403_s23 = int_to_ptr.hbm [resolvable:$true] %s402_s23 }
  0x58   : > { %s1831_s11 = sshra.s32 %s403_s23, 4  ;;  %s1838_s4 = scalar_lea.hbm %s2377_s2, 32  ;;  %s1832_s11 = int_to_ptr.hbm [resolvable:$true] %s1831_s11 }
  0x59   : > { %s1833_s6 = scalar_lea.hbm %s1832_s11, 16  ;;  %p1839_p2 = scmp.lt.s32.totalorder %s1832_s11, %s2377_s2 }
  0x5a   : > { %p1834_p7 = scmp.ne.s32.totalorder %s1832_s11, %s1833_s6  ;;  %p1840_p10 = scmp.lt.s32.totalorder %s1838_s4, %s1833_s6 }
  0x5c   : > { %p1836_p1 = pnand %p1834_p7, %p1715_p12  ;;  %p1841_p13 = por %p1840_p10, %p1839_p2 }
  0x5e   : > { %p1837_p11 = pneg %p1836_p1 }
  0x60   : > { %p1842_p0 = pnand %p1841_p13, %p1837_p11 }
  0x62   : > { %1845 = shalt.err (!%p1842_p0)
}
  0x63   : > { %1582 = dma.hbm_to_vmem [thread:$0]  (!%p2162_p9), %s403_s23, 256, %s405_s17, %s2172_s22  }
  0x64   : > { %s1503_s25 = sshll.u32 %s2154_s24, 3  ;;  %s1504_s26 = sshll.u32 %s2005_s12, 3 }
  0x65   : > { %s419_s28 = scalar_lea.hbm %s2382_s7, %s1504_s26  ;;  %s415_s14 = scalar_lea.vmem [#allocation14], %s1503_s25 }
  0x66   : > { %s421_s30 = sshll.u32 %s419_s28, 4  ;;  %s423_s21 = sshll.u32 %s415_s14, 4  ;;  %s422_s30 = int_to_ptr.hbm [resolvable:$true] %s421_s30  ;;  %s424_s21 = int_to_ptr.vmem [resolvable:$true] %s423_s21 }
  0x67   : > { %s412_s11 = scalar_lea.sflag [#allocation15], %s2154_s24  ;;  %s1861_s6 = sshra.s32 %s422_s30, 4  ;;  %s1862_s6 = int_to_ptr.hbm [resolvable:$true] %s1861_s6 }
  0x68   : > { %s1863_s1 = scalar_lea.hbm %s1862_s6, 8  ;;  %s1868_s23 = scalar_lea.hbm %s2382_s7, 16 }
  0x69   : > { %p1864_p5 = scmp.ne.s32.totalorder %s1862_s6, %s1863_s1  ;;  %p1869_p11 = scmp.lt.s32.totalorder %s1862_s6, %s2382_s7 }
  0x6a   : > { %p1870_p2 = scmp.lt.s32.totalorder %s1868_s23, %s1863_s1 }
  0x6b   : > { %p1866_p7 = pnand %p1864_p5, %p1715_p12 }
  0x6c   : > { %p1871_p10 = por %p1870_p2, %p1869_p11 }
  0x6d   : > { %p1867_p1 = pneg %p1866_p7 }
  0x6f   : > { %p1872_p13 = pnand %p1871_p10, %p1867_p1 }
  0x71   : > { %1875 = shalt.err (!%p1872_p13)
}
  0x72   : > { %1585 = dma.hbm_to_vmem [thread:$0]  (!%p2162_p9), %s422_s30, 128, %s424_s21, %s412_s11  }
  0x73   : > { %432 = sbr.rel (%p2108_p8) target bundleno = 994 (0x3e2), region = 52  ;;  %s2258_s24 = sand.u32 (!%p2108_p8), 1, %s1997_s10  }
  0x74   : > { %s2261_s27 = sshll.u32 (!%p2108_p8), %s2258_s24, 4  ;;  %s435_s16 = scalar_lea.sflag (!%p2108_p8), [#allocation3], %s2258_s24 }
  0x75   : > { %s438_s25 = scalar_lea.vmem (!%p2108_p8), [#allocation2], %s2261_s27 }
  0x78   : > { %1964 = dma.done.wait (%p2095_p4), %s435_s16, 256  }
  0x79   : > { %1966 = vsyncadd (%p2095_p4), %s435_s16, 4294967040  ;;  %s444_s20 = sand.u32 1, %s2086_s13   ;;  %s448_s26 = scalar_lea.vmem [#allocation5], %s2261_s27 }
  0x7a   : > { %s445_s29 = scalar_lea.sflag [#allocation6], %s444_s20 }
  0x7b   : > { %1968 = dma.done.wait (%p2095_p4), %s445_s29, 512  }
  0x7c   : > { %1970 = vsyncadd (%p2095_p4), %s445_s29, 4294966784  ;;  %s458_s3 = scalar_lea.vmem [#allocation7], %s2261_s27  ;;  %p2418_p8 = scmp.eq.s32.totalorder %s2086_s13, 0 }
  0x7e   : > { %1972 = dma.done.wait (%p2418_p8), [#allocation9], 16384   ;;  %p2419_p9 = pmov %p2418_p8 }
  0x7f   : > { %p2420_p12 = pmov %p2418_p8 }
  0x80   : > { %1974 = vsyncadd (%p2419_p9), [#allocation9], 4294950912 }
  0x81   : > { %1976 = dma.done.wait (%p2420_p12), [#allocation12], 16384   ;;  %p2421_p0 = pmov %p2418_p8 }
  0x82   : > { %s1513_s5 = sshll.u32 %s2258_s24, 3  ;;  %s485_s28 = scalar_lea.sflag [#allocation15], %s2258_s24 }
  0x83   : > { %1978 = vsyncadd (%p2421_p0), [#allocation12], 4294950912  ;;  %s2286_s30 = scalar_lea.vmem [#allocation14], %s1513_s5 }
  0x84   : > { %1980 = dma.done.wait (%p2095_p4), %s485_s28, 128  }
  0x85   : > { %1982 = vsyncadd (%p2095_p4), %s485_s28, 4294967168  ;;  %v581_v0 = vld [vmem:[#allocation8 + $0xf8] sm:$0xff]  ;;  %v579_v2 = vld [vmem:[#allocation8 + $0xe8] sm:$0xff]  ;;  %vm1003_vm0 = vcmask 64512   ;;  %s2317_s15 = scalar_lea.vmem [#allocation17], %s2261_s27  ;;  %s1530_s14 = sshll.u32 %s2086_s13, 4 }
  0x86   : > { %v613_v1 = vld [vmem:[#allocation8 + $0x1f8] sm:$0xff]  ;;  %654 = vmatpush.msra.mxu2 %v581_v0  ;;  %v611_v3 = vld [vmem:[#allocation8 + $0x1e8] sm:$0xff]  ;;  %v580_v6 = vld [vmem:[#allocation8 + $0xf0] sm:$0xff]  ;;  %s1273_s6 = scalar_lea.hbm %s2384_s9, %s1530_s14  ;;  %s1274_s22 = sshll.u32 %s2317_s15, 4  ;;  %s1275_s22 = int_to_ptr.vmem [resolvable:$true] %s1274_s22 }
  0x87   : > { %674 = vmatpush.msra.mxu3 %v613_v1  ;;  %v577_v4 = vld [vmem:[#allocation8 + $0xd8] sm:$0xff]  ;;  %v612_v7 = vld [vmem:[#allocation8 + $0x1f0] sm:$0xff]  ;;  %v575_v8 = vld [vmem:[#allocation8 + $0xc8] sm:$0xff]  ;;  %614 = vmatpush.msra.mxu0 %v580_v6  ;;  %s1276_s1 = sshll.u32 %s1273_s6, 4  ;;  %s1247_s17 = scalar_lea.sflag [#allocation18], %s2258_s24  ;;  %s1277_s1 = int_to_ptr.hbm [resolvable:$true] %s1276_s1 }
  0x88   : > { %v609_v5 = vld [vmem:[#allocation8 + $0x1d8] sm:$0xff]  ;;  %655 = vmatpush.msra.mxu2 %v579_v2  ;;  %v607_v9 = vld [vmem:[#allocation8 + $0x1c8] sm:$0xff]  ;;  %634 = vmatpush.msra.mxu1 %v612_v7  ;;  %v578_v10 = vld [vmem:[#allocation8 + $0xe0] sm:$0xff]  ;;  %s1905_s23 = sshra.s32 %s1277_s1, 4  ;;  %s1911_s13 = scalar_lea.hbm %s2384_s9, 32  ;;  %s1906_s23 = int_to_ptr.hbm [resolvable:$true] %s1905_s23 }
  0x89   : > { %675 = vmatpush.msra.mxu3 %v611_v3  ;;  %v573_v11 = vld [vmem:[#allocation8 + $0xb8] sm:$0xff]  ;;  %v610_v12 = vld [vmem:[#allocation8 + $0x1e0] sm:$0xff]  ;;  %615 = vmatpush.msra.mxu0 %v578_v10  ;;  %v576_v14 = vld [vmem:[#allocation8 + $0xd0] sm:$0xff]  ;;  %s1907_s18 = scalar_lea.hbm %s1906_s23, 16  ;;  %p1912_p1 = scmp.lt.s32.totalorder %s1906_s23, %s2384_s9 }
  0x8a   : > { %656 = vmatpush.msra.mxu2 %v577_v4  ;;  %v605_v13 = vld [vmem:[#allocation8 + $0x1b8] sm:$0xff]  ;;  %635 = vmatpush.msra.mxu1 %v610_v12  ;;  %v608_v15 = vld [vmem:[#allocation8 + $0x1d0] sm:$0xff]  ;;  %v574_v16 = vld [vmem:[#allocation8 + $0xc0] sm:$0xff]  ;;  %p1908_p4 = scmp.ne.s32.totalorder %s1906_s23, %s1907_s18  ;;  %p1913_p11 = scmp.lt.s32.totalorder %s1911_s13, %s1907_s18 }
  0x8b   : > { %676 = vmatpush.msra.mxu3 %v609_v5  ;;  %v606_v17 = vld [vmem:[#allocation8 + $0x1c0] sm:$0xff]  ;;  %v571_v18 = vld [vmem:[#allocation8 + $0xa8] sm:$0xff]  ;;  %616 = vmatpush.msra.mxu0 %v576_v14  ;;  %v572_v20 = vld [vmem:[#allocation8 + $0xb0] sm:$0xff] }
  0x8c   : > { %657 = vmatpush.msra.mxu2 %v575_v8  ;;  %v603_v19 = vld [vmem:[#allocation8 + $0x1a8] sm:$0xff]  ;;  %636 = vmatpush.msra.mxu1 %v608_v15  ;;  %v604_v21 = vld [vmem:[#allocation8 + $0x1b0] sm:$0xff]  ;;  %v569_v22 = vld [vmem:[#allocation8 + $0x98] sm:$0xff]  ;;  %p1909_p5 = pnand %p1908_p4, %p2145_p3  ;;  %p1914_p2 = por %p1913_p11, %p1912_p1 }
  0x8d   : > { %677 = vmatpush.msra.mxu3 %v607_v9  ;;  %v601_v23 = vld [vmem:[#allocation8 + $0x198] sm:$0xff]  ;;  %617 = vmatpush.msra.mxu0 %v574_v16  ;;  %v570_v24 = vld [vmem:[#allocation8 + $0xa0] sm:$0xff]  ;;  %v567_v26 = vld [vmem:[#allocation8 + $0x88] sm:$0xff] }
  0x8e   : > { %658 = vmatpush.msra.mxu2 %v573_v11  ;;  %637 = vmatpush.msra.mxu1 %v606_v17  ;;  %v602_v25 = vld [vmem:[#allocation8 + $0x1a0] sm:$0xff]  ;;  %v599_v27 = vld [vmem:[#allocation8 + $0x188] sm:$0xff]  ;;  %v568_v28 = vld [vmem:[#allocation8 + $0x90] sm:$0xff]  ;;  %p1910_p7 = pneg %p1909_p5 }
  0x8f   : > { %678 = vmatpush.msra.mxu3 %v605_v13  ;;  %618 = vmatpush.msra.mxu0 %v572_v20  ;;  %v600_v29 = vld [vmem:[#allocation8 + $0x190] sm:$0xff]  ;;  %v565_v30 = vld [vmem:[#allocation8 + $0x78] sm:$0xff]  ;;  %v566_v32 = vld [vmem:[#allocation8 + $0x80] sm:$0xff] }
  0x90   : > { %659 = vmatpush.msra.mxu2 %v571_v18  ;;  %638 = vmatpush.msra.mxu1 %v604_v21  ;;  %v597_v31 = vld [vmem:[#allocation8 + $0x178] sm:$0xff]  ;;  %v598_v33 = vld [vmem:[#allocation8 + $0x180] sm:$0xff]  ;;  %v563_v34 = vld [vmem:[#allocation8 + $0x68] sm:$0xff]  ;;  %p1915_p10 = pnand %p1914_p2, %p1910_p7 }
  0x91   : > { %679 = vmatpush.msra.mxu3 %v603_v19  ;;  %619 = vmatpush.msra.mxu0 %v570_v24  ;;  %v595_v35 = vld [vmem:[#allocation8 + $0x168] sm:$0xff]  ;;  %v564_v36 = vld [vmem:[#allocation8 + $0x70] sm:$0xff]  ;;  %v561_v38 = vld [vmem:[#allocation8 + $0x58] sm:$0xff] }
  0x92   : > { %660 = vmatpush.msra.mxu2 %v569_v22  ;;  %639 = vmatpush.msra.mxu1 %v602_v25  ;;  %v596_v37 = vld [vmem:[#allocation8 + $0x170] sm:$0xff]  ;;  %v593_v39 = vld [vmem:[#allocation8 + $0x158] sm:$0xff]  ;;  %v562_v40 = vld [vmem:[#allocation8 + $0x60] sm:$0xff] }
  0x93   : > { %680 = vmatpush.msra.mxu3 %v601_v23  ;;  %620 = vmatpush.msra.mxu0 %v568_v28  ;;  %v594_v41 = vld [vmem:[#allocation8 + $0x160] sm:$0xff]  ;;  %v559_v42 = vld [vmem:[#allocation8 + $0x48] sm:$0xff]  ;;  %v560_v44 = vld [vmem:[#allocation8 + $0x50] sm:$0xff] }
  0x94   : > { %661 = vmatpush.msra.mxu2 %v567_v26  ;;  %640 = vmatpush.msra.mxu1 %v600_v29  ;;  %v591_v43 = vld [vmem:[#allocation8 + $0x148] sm:$0xff]  ;;  %v592_v45 = vld [vmem:[#allocation8 + $0x150] sm:$0xff]  ;;  %v557_v46 = vld [vmem:[#allocation8 + $0x38] sm:$0xff] }
  0x95   : > { %681 = vmatpush.msra.mxu3 %v599_v27  ;;  %621 = vmatpush.msra.mxu0 %v566_v32  ;;  %v589_v47 = vld [vmem:[#allocation8 + $0x138] sm:$0xff]  ;;  %v558_v48 = vld [vmem:[#allocation8 + $0x40] sm:$0xff]  ;;  %v555_v50 = vld [vmem:[#allocation8 + $0x28] sm:$0xff] }
  0x96   : > { %662 = vmatpush.msra.mxu2 %v565_v30  ;;  %641 = vmatpush.msra.mxu1 %v598_v33  ;;  %v590_v49 = vld [vmem:[#allocation8 + $0x140] sm:$0xff]  ;;  %v587_v51 = vld [vmem:[#allocation8 + $0x128] sm:$0xff]  ;;  %v556_v52 = vld [vmem:[#allocation8 + $0x30] sm:$0xff] }
  0x97   : > { %682 = vmatpush.msra.mxu3 %v597_v31  ;;  %622 = vmatpush.msra.mxu0 %v564_v36  ;;  %v588_v53 = vld [vmem:[#allocation8 + $0x130] sm:$0xff]  ;;  %v553_v54 = vld [vmem:[#allocation8 + $0x18] sm:$0xff]  ;;  %v554_v56 = vld [vmem:[#allocation8 + $0x20] sm:$0xff] }
  0x98   : > { %663 = vmatpush.msra.mxu2 %v563_v34  ;;  %642 = vmatpush.msra.mxu1 %v596_v37  ;;  %v585_v55 = vld [vmem:[#allocation8 + $0x118] sm:$0xff]  ;;  %v586_v57 = vld [vmem:[#allocation8 + $0x120] sm:$0xff]  ;;  %v551_v58 = vld [vmem:[#allocation8 + $0x8] sm:$0xff] }
  0x99   : > { %683 = vmatpush.msra.mxu3 %v595_v35  ;;  %623 = vmatpush.msra.mxu0 %v562_v40  ;;  %v583_v59 = vld [vmem:[#allocation8 + $0x108] sm:$0xff]  ;;  %v725_v60 = vld [vmem:[#allocation10 + $0xf8] sm:$0xff]  ;;  %v552_v62 = vld [vmem:[#allocation8 + $0x10] sm:$0xff] }
  0x9a   : > { %664 = vmatpush.msra.mxu2 %v561_v38  ;;  %643 = vmatpush.msra.mxu1 %v594_v41  ;;  %v757_v61 = vld [vmem:[#allocation10 + $0x1f8] sm:$0xff]  ;;  %v584_v63 = vld [vmem:[#allocation8 + $0x110] sm:$0xff]  ;;  %v723_v0 = vld [vmem:[#allocation10 + $0xe8] sm:$0xff] }
  0x9b   : > { %684 = vmatpush.msra.mxu3 %v593_v39  ;;  %624 = vmatpush.msra.mxu0 %v560_v44  ;;  %v755_v1 = vld [vmem:[#allocation10 + $0x1e8] sm:$0xff]  ;;  %v550_v2 = vld [vmem:[#allocation8] sm:$0xff]  ;;  %v721_v4 = vld [vmem:[#allocation10 + $0xd8] sm:$0xff] }
  0x9c   : > { %665 = vmatpush.msra.mxu2 %v559_v42  ;;  %644 = vmatpush.msra.mxu1 %v592_v45  ;;  %v582_v3 = vld [vmem:[#allocation8 + $0x100] sm:$0xff]  ;;  %v753_v5 = vld [vmem:[#allocation10 + $0x1d8] sm:$0xff]  ;;  %v724_v6 = vld [vmem:[#allocation10 + $0xf0] sm:$0xff] }
  0x9d   : > { %685 = vmatpush.msra.mxu3 %v591_v43  ;;  %625 = vmatpush.msra.mxu0 %v558_v48  ;;  %v756_v7 = vld [vmem:[#allocation10 + $0x1f0] sm:$0xff]  ;;  %v719_v8 = vld [vmem:[#allocation10 + $0xc8] sm:$0xff]  ;;  %v722_v10 = vld [vmem:[#allocation10 + $0xe0] sm:$0xff] }
  0x9e   : > { %666 = vmatpush.msra.mxu2 %v557_v46  ;;  %645 = vmatpush.msra.mxu1 %v590_v49  ;;  %v751_v9 = vld [vmem:[#allocation10 + $0x1c8] sm:$0xff]  ;;  %v754_v11 = vld [vmem:[#allocation10 + $0x1e0] sm:$0xff]  ;;  %v717_v12 = vld [vmem:[#allocation10 + $0xb8] sm:$0xff] }
  0x9f   : > { %686 = vmatpush.msra.mxu3 %v589_v47  ;;  %626 = vmatpush.msra.mxu0 %v556_v52  ;;  %v749_v13 = vld [vmem:[#allocation10 + $0x1b8] sm:$0xff]  ;;  %v720_v14 = vld [vmem:[#allocation10 + $0xd0] sm:$0xff]  ;;  %v715_v16 = vld [vmem:[#allocation10 + $0xa8] sm:$0xff] }
  0xa0   : > { %667 = vmatpush.msra.mxu2 %v555_v50  ;;  %646 = vmatpush.msra.mxu1 %v588_v53  ;;  %v752_v15 = vld [vmem:[#allocation10 + $0x1d0] sm:$0xff]  ;;  %v747_v17 = vld [vmem:[#allocation10 + $0x1a8] sm:$0xff]  ;;  %v718_v18 = vld [vmem:[#allocation10 + $0xc0] sm:$0xff] }
  0xa1   : > { %687 = vmatpush.msra.mxu3 %v587_v51  ;;  %627 = vmatpush.msra.mxu0 %v554_v56  ;;  %v750_v19 = vld [vmem:[#allocation10 + $0x1c0] sm:$0xff]  ;;  %v713_v20 = vld [vmem:[#allocation10 + $0x98] sm:$0xff]  ;;  %v716_v22 = vld [vmem:[#allocation10 + $0xb0] sm:$0xff] }
  0xa2   : > { %668 = vmatpush.msra.mxu2 %v553_v54  ;;  %647 = vmatpush.msra.mxu1 %v586_v57  ;;  %v745_v21 = vld [vmem:[#allocation10 + $0x198] sm:$0xff]  ;;  %v748_v23 = vld [vmem:[#allocation10 + $0x1b0] sm:$0xff]  ;;  %v711_v24 = vld [vmem:[#allocation10 + $0x88] sm:$0xff] }
  0xa3   : > { %688 = vmatpush.msra.mxu3 %v585_v55  ;;  %628 = vmatpush.msra.mxu0 %v552_v62  ;;  %v743_v25 = vld [vmem:[#allocation10 + $0x188] sm:$0xff]  ;;  %v714_v26 = vld [vmem:[#allocation10 + $0xa0] sm:$0xff]  ;;  %v709_v28 = vld [vmem:[#allocation10 + $0x78] sm:$0xff] }
  0xa4   : > { %669 = vmatpush.msra.mxu2 %v551_v58  ;;  %648 = vmatpush.msra.mxu1 %v584_v63  ;;  %v746_v27 = vld [vmem:[#allocation10 + $0x1a0] sm:$0xff]  ;;  %v741_v29 = vld [vmem:[#allocation10 + $0x178] sm:$0xff]  ;;  %v712_v30 = vld [vmem:[#allocation10 + $0x90] sm:$0xff] }
  0xa5   : > { %689 = vmatpush.msra.mxu3 %v583_v59  ;;  %629 = vmatpush.msra.mxu0 %v550_v2  ;;  %v744_v31 = vld [vmem:[#allocation10 + $0x190] sm:$0xff]  ;;  %v707_v32 = vld [vmem:[#allocation10 + $0x68] sm:$0xff]  ;;  %v705_v36 = vld [vmem:[#allocation10 + $0x58] sm:$0xff] }
  0xa6   : > { %798 = vmatpush.msrb.mxu2 %v725_v60  ;;  %649 = vmatpush.msra.mxu1 %v582_v3  ;;  %v739_v33 = vld [vmem:[#allocation10 + $0x168] sm:$0xff]  ;;  %v544_v34 = vld [vmem:[%s438_s25] sm:$0xff]  ;;  %v737_v37 = vld [vmem:[#allocation10 + $0x158] sm:$0xff] }
  0xa7   : > { %818 = vmatpush.msrb.mxu3 %v757_v61  ;;  %758 = vmatpush.msrb.mxu0 %v724_v6  ;;  %v545_v35 = vld [vmem:[%s438_s25 + $0x8] sm:$0xff]  ;;  %v710_v38 = vld [vmem:[#allocation10 + $0x80] sm:$0xff]  ;;  %v708_v42 = vld [vmem:[#allocation10 + $0x70] sm:$0xff] }
  0xa8   : > { %799 = vmatpush.msrb.mxu2 %v723_v0  ;;  %778 = vmatpush.msrb.mxu1 %v756_v7  ;;  %v742_v39 = vld [vmem:[#allocation10 + $0x180] sm:$0xff]  ;;  %v703_v40 = vld [vmem:[#allocation10 + $0x48] sm:$0xff]  ;;  %v740_v43 = vld [vmem:[#allocation10 + $0x170] sm:$0xff] }
  0xa9   : > { %819 = vmatpush.msrb.mxu3 %v755_v1  ;;  %759 = vmatpush.msrb.mxu0 %v722_v10  ;;  %v735_v41 = vld [vmem:[#allocation10 + $0x148] sm:$0xff]  ;;  %v701_v44 = vld [vmem:[#allocation10 + $0x38] sm:$0xff]  ;;  %v706_v46 = vld [vmem:[#allocation10 + $0x60] sm:$0xff] }
  0xaa   : > { %800 = vmatpush.msrb.mxu2 %v721_v4  ;;  %779 = vmatpush.msrb.mxu1 %v754_v11  ;;  %v733_v45 = vld [vmem:[#allocation10 + $0x138] sm:$0xff]  ;;  %v738_v47 = vld [vmem:[#allocation10 + $0x160] sm:$0xff]  ;;  %v699_v48 = vld [vmem:[#allocation10 + $0x28] sm:$0xff] }
  0xab   : > { %820 = vmatpush.msrb.mxu3 %v753_v5  ;;  %760 = vmatpush.msrb.mxu0 %v720_v14  ;;  %v731_v49 = vld [vmem:[#allocation10 + $0x128] sm:$0xff]  ;;  %v704_v50 = vld [vmem:[#allocation10 + $0x50] sm:$0xff]  ;;  %v697_v52 = vld [vmem:[#allocation10 + $0x18] sm:$0xff] }
  0xac   : > { %801 = vmatpush.msrb.mxu2 %v719_v8  ;;  %780 = vmatpush.msrb.mxu1 %v752_v15  ;;  %v736_v51 = vld [vmem:[#allocation10 + $0x150] sm:$0xff]  ;;  %v729_v53 = vld [vmem:[#allocation10 + $0x118] sm:$0xff]  ;;  %v702_v54 = vld [vmem:[#allocation10 + $0x40] sm:$0xff] }
  0xad   : > { %821 = vmatpush.msrb.mxu3 %v751_v9  ;;  %761 = vmatpush.msrb.mxu0 %v718_v18  ;;  %v734_v55 = vld [vmem:[#allocation10 + $0x140] sm:$0xff]  ;;  %v695_v56 = vld [vmem:[#allocation10 + $0x8] sm:$0xff]  ;;  %v700_v60 = vld [vmem:[#allocation10 + $0x30] sm:$0xff] }
  0xae   : > { %802 = vmatpush.msrb.mxu2 %v717_v12  ;;  %781 = vmatpush.msrb.mxu1 %v750_v19  ;;  %v727_v57 = vld [vmem:[#allocation10 + $0x108] sm:$0xff]  ;;  %v546_v58 = vld [vmem:[%s448_s26] sm:$0xff]  ;;  %v869_v62 = vld [vmem:[#allocation11 + $0xf8] sm:$0xff] }
  0xaf   : > { %822 = vmatpush.msrb.mxu3 %v749_v13  ;;  %762 = vmatpush.msrb.mxu0 %v716_v22  ;;  %v547_v59 = vld [vmem:[%s448_s26 + $0x8] sm:$0xff]  ;;  %v732_v61 = vld [vmem:[#allocation10 + $0x130] sm:$0xff]  ;;  %v698_v0 = vld [vmem:[#allocation10 + $0x20] sm:$0xff] }
  0xb0   : > { %803 = vmatpush.msrb.mxu2 %v715_v16  ;;  %782 = vmatpush.msrb.mxu1 %v748_v23  ;;  %v901_v63 = vld [vmem:[#allocation11 + $0x1f8] sm:$0xff]  ;;  %v730_v1 = vld [vmem:[#allocation10 + $0x120] sm:$0xff]  ;;  %v867_v2 = vld [vmem:[#allocation11 + $0xe8] sm:$0xff] }
  0xb1   : > { %823 = vmatpush.msrb.mxu3 %v747_v17  ;;  %763 = vmatpush.msrb.mxu0 %v714_v26  ;;  %v899_v3 = vld [vmem:[#allocation11 + $0x1e8] sm:$0xff]  ;;  %v696_v4 = vld [vmem:[#allocation10 + $0x10] sm:$0xff]  ;;  %v865_v6 = vld [vmem:[#allocation11 + $0xd8] sm:$0xff] }
  0xb2   : > { %804 = vmatpush.msrb.mxu2 %v713_v20  ;;  %783 = vmatpush.msrb.mxu1 %v746_v27  ;;  %v728_v5 = vld [vmem:[#allocation10 + $0x110] sm:$0xff]  ;;  %v897_v7 = vld [vmem:[#allocation11 + $0x1d8] sm:$0xff]  ;;  %v694_v8 = vld [vmem:[#allocation10] sm:$0xff] }
  0xb3   : > { %824 = vmatpush.msrb.mxu3 %v745_v21  ;;  %764 = vmatpush.msrb.mxu0 %v712_v30  ;;  %v726_v9 = vld [vmem:[#allocation10 + $0x100] sm:$0xff]  ;;  %v868_v10 = vld [vmem:[#allocation11 + $0xf0] sm:$0xff]  ;;  %v863_v11 = vld [vmem:[#allocation11 + $0xc8] sm:$0xff] }
  0xb4   : > { %805 = vmatpush.msrb.mxu2 %v711_v24  ;;  %784 = vmatpush.msrb.mxu1 %v744_v31  ;;  %v895_v12 = vld [vmem:[#allocation11 + $0x1c8] sm:$0xff]  ;;  %v900_v13 = vld [vmem:[#allocation11 + $0x1f0] sm:$0xff]  ;;  %v866_v14 = vld [vmem:[#allocation11 + $0xe0] sm:$0xff] }
  0xb5   : > { %825 = vmatpush.msrb.mxu3 %v743_v25  ;;  %670 = vmatmul.f32.vlgmr.msra.gmra.mxu2 %v544_v34  ;;  %v861_v15 = vld [vmem:[#allocation11 + $0xb8] sm:$0xff]  ;;  %v898_v17 = vld [vmem:[#allocation11 + $0x1e0] sm:$0xff]  ;;  %v864_v18 = vld [vmem:[#allocation11 + $0xd0] sm:$0xff] }
  0xb6   : > { %806 = vmatpush.msrb.mxu2 %v709_v28  ;;  %690 = vmatmul.f32.vlgmr.msra.gmra.mxu3 %v545_v35  ;;  %v893_v16 = vld [vmem:[#allocation11 + $0x1b8] sm:$0xff]  ;;  %v859_v19 = vld [vmem:[#allocation11 + $0xa8] sm:$0xff]  ;;  %v896_v21 = vld [vmem:[#allocation11 + $0x1d0] sm:$0xff] }
  0xb7   : > { %826 = vmatpush.msrb.mxu3 %v741_v29  ;;  %765 = vmatpush.msrb.mxu0 %v710_v38  ;;  %v891_v20 = vld [vmem:[#allocation11 + $0x1a8] sm:$0xff]  ;;  %v862_v22 = vld [vmem:[#allocation11 + $0xc0] sm:$0xff]  ;;  %v857_v23 = vld [vmem:[#allocation11 + $0x98] sm:$0xff] }
  0xb8   : > { %807 = vmatpush.msrb.mxu2 %v707_v32  ;;  %785 = vmatpush.msrb.mxu1 %v742_v39  ;;  %v889_v24 = vld [vmem:[#allocation11 + $0x198] sm:$0xff]  ;;  %v860_v25 = vld [vmem:[#allocation11 + $0xb0] sm:$0xff]  ;;  %v855_v26 = vld [vmem:[#allocation11 + $0x88] sm:$0xff] }
  0xb9   : > { %827 = vmatpush.msrb.mxu3 %v739_v33  ;;  %766 = vmatpush.msrb.mxu0 %v708_v42  ;;  %v887_v27 = vld [vmem:[#allocation11 + $0x188] sm:$0xff]  ;;  %v858_v28 = vld [vmem:[#allocation11 + $0xa0] sm:$0xff]  ;;  %v853_v29 = vld [vmem:[#allocation11 + $0x78] sm:$0xff] }
  0xba   : > { %808 = vmatpush.msrb.mxu2 %v705_v36  ;;  %786 = vmatpush.msrb.mxu1 %v740_v43  ;;  %v885_v30 = vld [vmem:[#allocation11 + $0x178] sm:$0xff]  ;;  %v856_v31 = vld [vmem:[#allocation11 + $0x90] sm:$0xff]  ;;  %v851_v32 = vld [vmem:[#allocation11 + $0x68] sm:$0xff] }
  0xbb   : > { %828 = vmatpush.msrb.mxu3 %v737_v37  ;;  %767 = vmatpush.msrb.mxu0 %v706_v46  ;;  %v883_v33 = vld [vmem:[#allocation11 + $0x168] sm:$0xff]  ;;  %v852_v36 = vld [vmem:[#allocation11 + $0x70] sm:$0xff]  ;;  %v850_v38 = vld [vmem:[#allocation11 + $0x60] sm:$0xff] }
  0xbc   : > { %809 = vmatpush.msrb.mxu2 %v703_v40  ;;  %787 = vmatpush.msrb.mxu1 %v738_v47  ;;  %v847_v37 = vld [vmem:[#allocation11 + $0x48] sm:$0xff]  ;;  %v845_v39 = vld [vmem:[#allocation11 + $0x38] sm:$0xff]  ;;  %v848_v40 = vld [vmem:[#allocation11 + $0x50] sm:$0xff] }
  0xbd   : > { %829 = vmatpush.msrb.mxu3 %v735_v41  ;;  %768 = vmatpush.msrb.mxu0 %v704_v50  ;;  %v894_v41 = vld [vmem:[#allocation11 + $0x1c0] sm:$0xff]  ;;  %v881_v42 = vld [vmem:[#allocation11 + $0x158] sm:$0xff]  ;;  %v892_v43 = vld [vmem:[#allocation11 + $0x1b0] sm:$0xff] }
  0xbe   : > { %810 = vmatpush.msrb.mxu2 %v701_v44  ;;  %788 = vmatpush.msrb.mxu1 %v736_v51  ;;  %v879_v44 = vld [vmem:[#allocation11 + $0x148] sm:$0xff]  ;;  %v844_v47 = vld [vmem:[#allocation11 + $0x30] sm:$0xff] }
  0xbf   : > { %830 = vmatpush.msrb.mxu3 %v733_v45  ;;  %769 = vmatpush.msrb.mxu0 %v702_v54  ;;  %v846_v45 = vld [vmem:[#allocation11 + $0x40] sm:$0xff]  ;;  %v843_v46 = vld [vmem:[#allocation11 + $0x28] sm:$0xff]  ;;  %v888_v50 = vld [vmem:[#allocation11 + $0x190] sm:$0xff] }
  0xc0   : > { %811 = vmatpush.msrb.mxu2 %v699_v48  ;;  %789 = vmatpush.msrb.mxu1 %v734_v55  ;;  %v890_v48 = vld [vmem:[#allocation11 + $0x1a0] sm:$0xff]  ;;  %v875_v51 = vld [vmem:[#allocation11 + $0x128] sm:$0xff]  ;;  %v873_v54 = vld [vmem:[#allocation11 + $0x118] sm:$0xff] }
  0xc1   : > { %831 = vmatpush.msrb.mxu3 %v731_v49  ;;  %630 = vmatmul.f32.vlgmr.msra.gmra.mxu0 %v544_v34  ;;  %v854_v34 = vld [vmem:[#allocation11 + $0x80] sm:$0xff]  ;;  %v877_v49 = vld [vmem:[#allocation11 + $0x138] sm:$0xff] }
  0xc2   : > { %812 = vmatpush.msrb.mxu2 %v697_v52  ;;  %650 = vmatmul.f32.vlgmr.msra.gmra.mxu1 %v545_v35  ;;  %v849_v35 = vld [vmem:[#allocation11 + $0x58] sm:$0xff]  ;;  %v842_v55 = vld [vmem:[#allocation11 + $0x20] sm:$0xff] }
  0xc3   : > { %832 = vmatpush.msrb.mxu3 %v729_v53  ;;  %770 = vmatpush.msrb.mxu0 %v700_v60  ;;  %v841_v52 = vld [vmem:[#allocation11 + $0x18] sm:$0xff]  ;;  %v886_v53 = vld [vmem:[#allocation11 + $0x180] sm:$0xff]  ;;  %v871_v60 = vld [vmem:[#allocation11 + $0x108] sm:$0xff] }
  0xc4   : > { %813 = vmatpush.msrb.mxu2 %v695_v56  ;;  %790 = vmatpush.msrb.mxu1 %v732_v61  ;;  %v839_v56 = vld [vmem:[#allocation11 + $0x8] sm:$0xff] }
  0xc5   : > { %833 = vmatpush.msrb.mxu3 %v727_v57  ;;  %814 = vmatmul.f32.vlgmr.msrb.gmra.mxu2 %v546_v58  ;;  %v840_v57 = vld [vmem:[#allocation11 + $0x10] sm:$0xff]  ;;  %v549_v61 = vld [vmem:[%s458_s3 + $0x8] sm:$0xff] }
  0xc6   : > { %834 = vmatmul.f32.vlgmr.msrb.gmra.mxu3 %v547_v59  ;;  %942 = vmatpush.msra.mxu2 %v869_v62  ;;  %v882_v62 = vld [vmem:[#allocation11 + $0x160] sm:$0xff] }
  0xc7   : > { %962 = vmatpush.msra.mxu3 %v901_v63  ;;  %771 = vmatpush.msrb.mxu0 %v698_v0  ;;  %v838_v63 = vld [vmem:[#allocation11] sm:$0xff]  ;;  %v880_v0 = vld [vmem:[#allocation11 + $0x150] sm:$0xff] }
  0xc8   : > { %791 = vmatpush.msrb.mxu1 %v730_v1  ;;  %943 = vmatpush.msra.mxu2 %v867_v2  ;;  %v878_v1 = vld [vmem:[#allocation11 + $0x140] sm:$0xff]  ;;  %v876_v2 = vld [vmem:[#allocation11 + $0x130] sm:$0xff] }
  0xc9   : > { %963 = vmatpush.msra.mxu3 %v899_v3  ;;  %772 = vmatpush.msrb.mxu0 %v696_v4  ;;  %v874_v3 = vld [vmem:[#allocation11 + $0x120] sm:$0xff]  ;;  %v872_v4 = vld [vmem:[#allocation11 + $0x110] sm:$0xff] }
  0xca   : > { %792 = vmatpush.msrb.mxu1 %v728_v5  ;;  %944 = vmatpush.msra.mxu2 %v865_v6  ;;  %v870_v5 = vld [vmem:[#allocation11 + $0x100] sm:$0xff] }
  0xcb   : > { %964 = vmatpush.msra.mxu3 %v897_v7  ;;  %773 = vmatpush.msrb.mxu0 %v694_v8 }
  0xcc   : > { %793 = vmatpush.msrb.mxu1 %v726_v9  ;;  %774 = vmatmul.f32.vlgmr.msrb.gmra.mxu0 %v546_v58  ;;  %v548_v58 = vld [vmem:[%s458_s3] sm:$0xff] }
  0xcd   : > { %794 = vmatmul.f32.vlgmr.msrb.gmra.mxu1 %v547_v59  ;;  %902 = vmatpush.msra.mxu0 %v868_v10  ;;  %v884_v59 = vld [vmem:[#allocation11 + $0x170] sm:$0xff] }
  0xce   : > { %945 = vmatpush.msra.mxu2 %v863_v11  ;;  %965 = vmatpush.msra.mxu3 %v895_v12 }
  0xcf   : > { %922 = vmatpush.msra.mxu1 %v900_v13  ;;  %903 = vmatpush.msra.mxu0 %v866_v14 }
  0xd0   : > { %946 = vmatpush.msra.mxu2 %v861_v15  ;;  %966 = vmatpush.msra.mxu3 %v893_v16 }
  0xd1   : > { %923 = vmatpush.msra.mxu1 %v898_v17  ;;  %904 = vmatpush.msra.mxu0 %v864_v18 }
  0xd2   : > { %947 = vmatpush.msra.mxu2 %v859_v19  ;;  %967 = vmatpush.msra.mxu3 %v891_v20 }
  0xd3   : > { %924 = vmatpush.msra.mxu1 %v896_v21  ;;  %905 = vmatpush.msra.mxu0 %v862_v22 }
  0xd4   : > { %948 = vmatpush.msra.mxu2 %v857_v23  ;;  %968 = vmatpush.msra.mxu3 %v889_v24  ;;  %v982_v24 = vld [vmem:[%s2286_s30] sm:$0xff] }
  0xd5   : > { %906 = vmatpush.msra.mxu0 %v860_v25  ;;  %925 = vmatpush.msra.mxu1 %v894_v41  ;;  %v1157_v41 = vld [vmem:[#allocation13 + $0x1f0] sm:$0xff] }
  0xd6   : > { %949 = vmatpush.msra.mxu2 %v855_v26  ;;  %969 = vmatpush.msra.mxu3 %v887_v27 }
  0xd7   : > { %907 = vmatpush.msra.mxu0 %v858_v28  ;;  %926 = vmatpush.msra.mxu1 %v892_v43  ;;  %v1125_v43 = vld [vmem:[#allocation13 + $0xf0] sm:$0xff] }
  0xd8   : > { %950 = vmatpush.msra.mxu2 %v853_v29  ;;  %970 = vmatpush.msra.mxu3 %v885_v30 }
  0xd9   : > { %908 = vmatpush.msra.mxu0 %v856_v31  ;;  %927 = vmatpush.msra.mxu1 %v890_v48  ;;  %v1153_v48 = vld [vmem:[#allocation13 + $0x1d0] sm:$0xff] }
  0xda   : > { %951 = vmatpush.msra.mxu2 %v851_v32  ;;  %971 = vmatpush.msra.mxu3 %v883_v33 }
  0xdb   : > { %909 = vmatpush.msra.mxu0 %v854_v34  ;;  %928 = vmatpush.msra.mxu1 %v888_v50  ;;  %v1154_v50 = vld [vmem:[#allocation13 + $0x1d8] sm:$0xff] }
  0xdc   : > { %952 = vmatpush.msra.mxu2 %v849_v35  ;;  %972 = vmatpush.msra.mxu3 %v881_v42  ;;  %v1158_v42 = vld [vmem:[#allocation13 + $0x1f8] sm:$0xff] }
  0xdd   : > { %910 = vmatpush.msra.mxu0 %v852_v36  ;;  %929 = vmatpush.msra.mxu1 %v886_v53  ;;  %v1122_v53 = vld [vmem:[#allocation13 + $0xd8] sm:$0xff] }
  0xde   : > { %953 = vmatpush.msra.mxu2 %v847_v37  ;;  %973 = vmatpush.msra.mxu3 %v879_v44  ;;  %v1155_v44 = vld [vmem:[#allocation13 + $0x1e0] sm:$0xff] }
  0xdf   : > { %911 = vmatpush.msra.mxu0 %v850_v38  ;;  %930 = vmatpush.msra.mxu1 %v884_v59  ;;  %v1117_v59 = vld [vmem:[#allocation13 + $0xb0] sm:$0xff] }
  0xe0   : > { %954 = vmatpush.msra.mxu2 %v845_v39  ;;  %974 = vmatpush.msra.mxu3 %v877_v49  ;;  %v1124_v49 = vld [vmem:[#allocation13 + $0xe8] sm:$0xff] }
  0xe1   : > { %912 = vmatpush.msra.mxu0 %v848_v40  ;;  %931 = vmatpush.msra.mxu1 %v882_v62  ;;  %v1148_v62 = vld [vmem:[#allocation13 + $0x1a8] sm:$0xff] }
  0xe2   : > { %955 = vmatpush.msra.mxu2 %v843_v46  ;;  %975 = vmatpush.msra.mxu3 %v875_v51  ;;  %v1156_v46 = vld [vmem:[#allocation13 + $0x1e8] sm:$0xff]  ;;  %v1121_v51 = vld [vmem:[#allocation13 + $0xd0] sm:$0xff] }
  0xe3   : > { %913 = vmatpush.msra.mxu0 %v846_v45  ;;  %932 = vmatpush.msra.mxu1 %v880_v0  ;;  %v1126_v45 = vld [vmem:[#allocation13 + $0xf8] sm:$0xff]  ;;  %v1116_v0 = vld [vmem:[#allocation13 + $0xa8] sm:$0xff] }
  0xe4   : > { %956 = vmatpush.msra.mxu2 %v841_v52  ;;  %976 = vmatpush.msra.mxu3 %v873_v54  ;;  %v1151_v52 = vld [vmem:[#allocation13 + $0x1c0] sm:$0xff]  ;;  %v1152_v54 = vld [vmem:[#allocation13 + $0x1c8] sm:$0xff] }
  0xe5   : > { %914 = vmatpush.msra.mxu0 %v844_v47  ;;  %933 = vmatpush.msra.mxu1 %v878_v1  ;;  %v1123_v47 = vld [vmem:[#allocation13 + $0xe0] sm:$0xff]  ;;  %v1145_v1 = vld [vmem:[#allocation13 + $0x190] sm:$0xff] }
  0xe6   : > { %957 = vmatpush.msra.mxu2 %v839_v56  ;;  %977 = vmatpush.msra.mxu3 %v871_v60  ;;  %v1120_v56 = vld [vmem:[#allocation13 + $0xc8] sm:$0xff]  ;;  %v1118_v60 = vld [vmem:[#allocation13 + $0xb8] sm:$0xff] }
  0xe7   : > { %915 = vmatpush.msra.mxu0 %v842_v55  ;;  %958 = vmatmul.f32.vlgmr.msra.gmra.mxu2 %v548_v58  ;;  %v1119_v55 = vld [vmem:[#allocation13 + $0xc0] sm:$0xff] }
  0xe8   : > { %978 = vmatmul.f32.vlgmr.msra.gmra.mxu3 %v549_v61  ;;  %934 = vmatpush.msra.mxu1 %v876_v2  ;;  %v1146_v2 = vld [vmem:[#allocation13 + $0x198] sm:$0xff] }
  0xe9   : > { %916 = vmatpush.msra.mxu0 %v840_v57  ;;  %v1149_v57 = vld [vmem:[#allocation13 + $0x1b0] sm:$0xff] }
  0xea   : > { %935 = vmatpush.msra.mxu1 %v874_v3  ;;  %v1113_v3 = vld [vmem:[#allocation13 + $0x90] sm:$0xff] }
  0xeb   : > { %917 = vmatpush.msra.mxu0 %v838_v63  ;;  %v1115_v63 = vld [vmem:[#allocation13 + $0xa0] sm:$0xff] }
  0xec   : > { %918 = vmatmul.f32.vlgmr.msra.gmra.mxu0 %v548_v58  ;;  %936 = vmatpush.msra.mxu1 %v872_v4  ;;  %v1150_v58 = vld [vmem:[#allocation13 + $0x1b8] sm:$0xff] }
  0xed   : > { %v1114_v4 = vld [vmem:[#allocation13 + $0x98] sm:$0xff] }
  0xee   : > { %937 = vmatpush.msra.mxu1 %v870_v5  ;;  %v1143_v5 = vld [vmem:[#allocation13 + $0x180] sm:$0xff] }
  0xef   : > { %938 = vmatmul.f32.vlgmr.msra.gmra.mxu1 %v549_v61  ;;  %v1147_v61 = vld [vmem:[#allocation13 + $0x1a0] sm:$0xff] }
 0x138   : > { %v671_v6 = vpop.f32.mrf.mxu2 }
 0x139   : > { %v691_v7 = vpop.f32.mrf.mxu3 }
 0x13a   : > { %v692_v15 = vadd.f32 %v691_v7, %v671_v6  ;;  %v1144_v6 = vld [vmem:[#allocation13 + $0x188] sm:$0xff]  ;;  %v1111_v7 = vld [vmem:[#allocation13 + $0x80] sm:$0xff] }
 0x13e   : > { %v631_v8 = vpop.f32.mrf.mxu0 }
 0x13f   : > { %v651_v9 = vpop.f32.mrf.mxu1 }
 0x140   : > { %v652_v17 = vadd.f32 %v651_v9, %v631_v8  ;;  %v1112_v8 = vld [vmem:[#allocation13 + $0x88] sm:$0xff] }
 0x148   : > { %v815_v10 = vpop.f32.mrf.mxu2 }
 0x149   : > { %v835_v11 = vpop.f32.mrf.mxu3  ;;  %v775_v13 = vpop.f32.mrf.mxu0 }
 0x14a   : > { %v836_v12 = vadd.f32 %v835_v11, %v815_v10  ;;  %v795_v14 = vpop.f32.mrf.mxu1  ;;  %v1141_v10 = vld [vmem:[#allocation13 + $0x170] sm:$0xff]  ;;  %v1142_v11 = vld [vmem:[#allocation13 + $0x178] sm:$0xff] }
 0x14b   : > { %v796_v16 = vadd.f32 %v795_v14, %v775_v13  ;;  %v1110_v13 = vld [vmem:[#allocation13 + $0x78] sm:$0xff]  ;;  %v1139_v14 = vld [vmem:[#allocation13 + $0x160] sm:$0xff] }
 0x14c   : > { %1054 = vmatpush.xpose.msrb.mxu2 %v836_v12  ;;  %v1109_v12 = vld [vmem:[#allocation13 + $0x70] sm:$0xff] }
 0x14d   : > { %998 = vmatpush.xpose.msrb.mxu0 %v796_v16  ;;  %v1107_v16 = vld [vmem:[#allocation13 + $0x60] sm:$0xff] }
 0x14f   : > { %1055 = vmatmul.f32.vlgmr.msrb.gmra.mxu2 %v692_v15  ;;  %v1140_v15 = vld [vmem:[#allocation13 + $0x168] sm:$0xff] }
 0x150   : > { %999 = vmatmul.f32.vlgmr.msrb.gmra.mxu0 %v652_v17  ;;  %1199 = vmatpush.msra.mxu2 %v1126_v45  ;;  %v1108_v17 = vld [vmem:[#allocation13 + $0x68] sm:$0xff] }
 0x151   : > { %1159 = vmatpush.msra.mxu0 %v1125_v43  ;;  %v1127_v43 = vld [vmem:[#allocation13 + $0x100] sm:$0xff]  ;;  %v1128_v45 = vld [vmem:[#allocation13 + $0x108] sm:$0xff] }
 0x152   : > { %1200 = vmatpush.msra.mxu2 %v1124_v49 }
 0x153   : > { %1160 = vmatpush.msra.mxu0 %v1123_v47  ;;  %v1096_v47 = vld [vmem:[#allocation13 + $0x8] sm:$0xff] }
 0x154   : > { %1201 = vmatpush.msra.mxu2 %v1122_v53 }
 0x155   : > { %1161 = vmatpush.msra.mxu0 %v1121_v51 }
 0x156   : > { %1202 = vmatpush.msra.mxu2 %v1120_v56 }
 0x157   : > { %1162 = vmatpush.msra.mxu0 %v1119_v55 }
 0x158   : > { %1203 = vmatpush.msra.mxu2 %v1118_v60 }
 0x159   : > { %1163 = vmatpush.msra.mxu0 %v1117_v59 }
 0x15a   : > { %1204 = vmatpush.msra.mxu2 %v1116_v0 }
 0x15b   : > { %1164 = vmatpush.msra.mxu0 %v1115_v63 }
 0x15c   : > { %1205 = vmatpush.msra.mxu2 %v1114_v4 }
 0x15d   : > { %1165 = vmatpush.msra.mxu0 %v1113_v3 }
 0x15e   : > { %1206 = vmatpush.msra.mxu2 %v1112_v8 }
 0x15f   : > { %1166 = vmatpush.msra.mxu0 %v1111_v7 }
 0x160   : > { %1207 = vmatpush.msra.mxu2 %v1110_v13 }
 0x161   : > { %1167 = vmatpush.msra.mxu0 %v1109_v12 }
 0x162   : > { %1208 = vmatpush.msra.mxu2 %v1108_v17 }
 0x163   : > { %1168 = vmatpush.msra.mxu0 %v1107_v16 }
 0x169   : > { %v919_v21 = vpop.f32.mrf.mxu0 }
 0x16a   : > { %v959_v18 = vpop.f32.mrf.mxu2 }
 0x16b   : > { %v979_v19 = vpop.f32.mrf.mxu3 }
 0x16c   : > { %v980_v20 = vadd.f32 %v979_v19, %v959_v18  ;;  %v939_v22 = vpop.f32.mrf.mxu1  ;;  %v1137_v18 = vld [vmem:[#allocation13 + $0x150] sm:$0xff]  ;;  %v1138_v19 = vld [vmem:[#allocation13 + $0x158] sm:$0xff] }
 0x16d   : > { %v940_v23 = vadd.f32 %v939_v22, %v919_v21  ;;  %v1106_v21 = vld [vmem:[#allocation13 + $0x58] sm:$0xff]  ;;  %v1135_v22 = vld [vmem:[#allocation13 + $0x140] sm:$0xff] }
 0x16e   : > { %1090 = vmatpush.msrb.mxu3 %v980_v20  ;;  %v1105_v20 = vld [vmem:[#allocation13 + $0x50] sm:$0xff]  ;;  %1209 = vmatpush.msra.mxu2 %v1106_v21 }
 0x16f   : > { %1034 = vmatpush.msrb.mxu1 %v940_v23  ;;  %v1136_v23 = vld [vmem:[#allocation13 + $0x148] sm:$0xff]  ;;  %1169 = vmatpush.msra.mxu0 %v1105_v20 }
 0x170   : > { %1219 = vmatpush.msra.mxu3 %v1158_v42  ;;  %v1097_v42 = vld [vmem:[#allocation13 + $0x10] sm:$0xff] }
 0x171   : > { %1179 = vmatpush.msra.mxu1 %v1157_v41 }
 0x172   : > { %1220 = vmatpush.msra.mxu3 %v1156_v46  ;;  %v1095_v46 = vld [vmem:[#allocation13] sm:$0xff] }
 0x173   : > { %1180 = vmatpush.msra.mxu1 %v1155_v44  ;;  %v1098_v44 = vld [vmem:[#allocation13 + $0x18] sm:$0xff] }
 0x174   : > { %1221 = vmatpush.msra.mxu3 %v1154_v50 }
 0x175   : > { %1181 = vmatpush.msra.mxu1 %v1153_v48 }
 0x176   : > { %1222 = vmatpush.msra.mxu3 %v1152_v54 }
 0x177   : > { %1182 = vmatpush.msra.mxu1 %v1151_v52 }
 0x178   : > { %1223 = vmatpush.msra.mxu3 %v1150_v58 }
 0x179   : > { %1183 = vmatpush.msra.mxu1 %v1149_v57 }
 0x17a   : > { %1224 = vmatpush.msra.mxu3 %v1148_v62 }
 0x17b   : > { %1184 = vmatpush.msra.mxu1 %v1147_v61 }
 0x17c   : > { %1225 = vmatpush.msra.mxu3 %v1146_v2 }
 0x17d   : > { %1185 = vmatpush.msra.mxu1 %v1145_v1 }
 0x17e   : > { %1226 = vmatpush.msra.mxu3 %v1144_v6 }
 0x17f   : > { %1186 = vmatpush.msra.mxu1 %v1143_v5 }
 0x180   : > { %1227 = vmatpush.msra.mxu3 %v1142_v11 }
 0x181   : > { %1187 = vmatpush.msra.mxu1 %v1141_v10 }
 0x182   : > { %1228 = vmatpush.msra.mxu3 %v1140_v15 }
 0x183   : > { %1188 = vmatpush.msra.mxu1 %v1139_v14 }
 0x184   : > { %1229 = vmatpush.msra.mxu3 %v1138_v19 }
 0x185   : > { %1189 = vmatpush.msra.mxu1 %v1137_v18 }
 0x186   : > { %1230 = vmatpush.msra.mxu3 %v1136_v23 }
 0x187   : > { %1190 = vmatpush.msra.mxu1 %v1135_v22 }
 0x1cd   : > { %v1000_v28 = vpop.f32.mrf.mxu0 }
 0x1ce   : > { %v1001_v29 = vadd.f32 %v1000_v28, %v982_v24  ;;  %v1133_v28 = vld [vmem:[#allocation13 + $0x130] sm:$0xff] }
 0x1cf   : > { %1191 = vmatpush.msra.mxu1 %v1133_v28 }
 0x1d0   : > { %v1004_v30 = vsel %vm1003_vm0, %v1001_v29, -inf }
 0x1d2   : > { %v1056_v25 = vpop.f32.mrf.mxu2 }
 0x1d3   : > { %v1057_v26 = vadd.f32 %v1056_v25, %v982_v24  ;;  %v1103_v25 = vld [vmem:[#allocation13 + $0x40] sm:$0xff] }
 0x1d4   : > { %1170 = vmatpush.msra.mxu0 %v1103_v25 }
 0x1d5   : > { %v1059_v27 = vsel %vm1003_vm0, %v1057_v26, -inf }
 0x1d6   : > { %1060 = vmax.xlane.f32.xlu0 %v1059_v27 }
 0x1de   : > { %1005 = vmax.xlane.f32.xlu0 %v1004_v30  ;;  %v1134_v30 = vld [vmem:[#allocation13 + $0x138] sm:$0xff] }
 0x1df   : > { %1231 = vmatpush.msra.mxu3 %v1134_v30 }
 0x249   : > { %v1061_v31 = vpop.xlane.xlu0 %1060 }
 0x24a   : > { %v1062_v32 = vsub.f32 %v1057_v26, %v1061_v31  ;;  %v1101_v31 = vld [vmem:[#allocation13 + $0x30] sm:$0xff] }
 0x24b   : > { %1171 = vmatpush.msra.mxu0 %v1101_v31 }
 0x24c   : > { %v1063_v33 = vmul.f32 1.442695, %v1062_v32  ;;  %v1131_v32 = vld [vmem:[#allocation13 + $0x120] sm:$0xff] }
 0x24d   : > { %1192 = vmatpush.msra.mxu1 %v1131_v32 }
 0x24e   : > { %1643 = vpow2.f32 %v1063_v33  ;;  %v1102_v33 = vld [vmem:[#allocation13 + $0x38] sm:$0xff] }
 0x251   : > { %v1006_v34 = vpop.xlane.xlu0 %1005 }
 0x252   : > { %v1007_v35 = vsub.f32 %v1001_v29, %v1006_v34  ;;  %v1104_v29 = vld [vmem:[#allocation13 + $0x48] sm:$0xff] }
 0x253   : > { %1210 = vmatpush.msra.mxu2 %v1104_v29  ;;  %v1132_v34 = vld [vmem:[#allocation13 + $0x128] sm:$0xff] }
 0x254   : > { %v2307_v36 = vpop.eup %1643  ;;  %v1008_v37 = vmul.f32 1.442695, %v1007_v35  ;;  %v1099_v35 = vld [vmem:[#allocation13 + $0x20] sm:$0xff]  ;;  %1232 = vmatpush.msra.mxu3 %v1132_v34 }
 0x255   : > { %v1065_v38 = vsel %vm1003_vm0, %v2307_v36, 0.0  ;;  %1211 = vmatpush.msra.mxu2 %v1102_v33  ;;  %1172 = vmatpush.msra.mxu0 %v1099_v35 }
 0x256   : > { %1645 = vpow2.f32 %v1008_v37  ;;  %1066 = vadd.xlane.f32.xlu1 %v1065_v38  ;;  %v1100_v37 = vld [vmem:[#allocation13 + $0x28] sm:$0xff]  ;;  %v1130_v38 = vld [vmem:[#allocation13 + $0x118] sm:$0xff] }
 0x257   : > { %1212 = vmatpush.msra.mxu2 %v1100_v37  ;;  %1233 = vmatpush.msra.mxu3 %v1130_v38 }
 0x258   : > { %1173 = vmatpush.msra.mxu0 %v1097_v42 }
 0x259   : > { %1213 = vmatpush.msra.mxu2 %v1098_v44  ;;  %1234 = vmatpush.msra.mxu3 %v1128_v45 }
 0x25a   : > { %1174 = vmatpush.msra.mxu0 %v1095_v46 }
 0x25b   : > { %1214 = vmatpush.msra.mxu2 %v1096_v47 }
 0x25c   : > { %v2311_v39 = vpop.eup %1645 }
 0x25d   : > { %v1010_v40 = vsel %vm1003_vm0, %v2311_v39, 0.0 }
 0x25e   : > { %1011 = vadd.xlane.f32.xlu1 %v1010_v40 }
 0x2c9   : > { %v1067_v9 = vpop.xlane.xlu1 %1066 }
 0x2ca   : > { %1647 = vrcp.f32 %v1067_v9 }
 0x2d0   : > { %v1648_v24 = vpop.eup %1647 }
 0x2d1   : > { %v1069_v26 = vmul.f32 %v1648_v24, %v2307_v36  ;;  %v1012_v27 = vpop.xlane.xlu1 %1011  ;;  %v1129_v36 = vld [vmem:[#allocation13 + $0x110] sm:$0xff] }
 0x2d2   : > { %1649 = vrcp.f32 %v1012_v27  ;;  %1193 = vmatpush.msra.mxu1 %v1129_v36 }
 0x2d3   : > { %1517 = vst.msk [vmem:[%s2317_s15 + $0x8] sm:$0xff] %vm1003_vm0, %v1069_v26  ;;  %1518 = vmatmul.msk.f32.vlgmr.msrb.gmra.mxu3 %vm1003_vm0, %v1069_v26 }
 0x2d4   : > { %1194 = vmatpush.msra.mxu1 %v1127_v43 }
 0x2d8   : > { %v1650_v40 = vpop.eup %1649 }
 0x2d9   : > { %v1014_v41 = vmul.f32 %v1650_v40, %v2311_v39 }
 0x2db   : > { %1015 = vst.msk [vmem:[%s2317_s15] sm:$0xff] %vm1003_vm0, %v1014_v41  ;;  %1516 = vmatmul.msk.f32.vlgmr.msrb.gmra.mxu1 %vm1003_vm0, %v1014_v41 }
 0x356   : > { %v1092_v39 = vpop.f32.mrf.mxu3 }
 0x357   : > { %1195 = vmatmul.f32.vlgmr.msra.gmra.mxu1 %v1092_v39  ;;  %1235 = vmatmul.f32.vlgmr.msra.gmra.mxu3 %v1092_v39 }
 0x358   : > { %v1036_v48 = vpop.f32.mrf.mxu1 }
 0x359   : > { %1175 = vmatmul.f32.vlgmr.msra.gmra.mxu0 %v1036_v48  ;;  %1215 = vmatmul.f32.vlgmr.msra.gmra.mxu2 %v1036_v48 }
 0x35a   : > { %1918 = shalt.err (!%p1915_p10)
}
 0x35b   : > { %s2013_s29 = smov 128   ;;  %s2014_s26 = smov 8  }
 0x35c   : > { %1557 = dma.vmem_to_hbm [thread:$0]  (%p2145_p3), %s1275_s22, 256, %s1277_s1, %s1247_s17, %s2013_s29, %s2013_s29, %s2014_s26  }
 0x35d   : > { %s1258_s28 = scalar_lea.hbm %s2383_s8, %s1530_s14  ;;  %s536_s30 = scalar_lea.vmem [#allocation16], %s2261_s27 }
 0x35e   : > { %s1260_s15 = sshll.u32 %s536_s30, 4  ;;  %s1262_s21 = sshll.u32 %s1258_s28, 4  ;;  %s1261_s15 = int_to_ptr.vmem [resolvable:$true] %s1260_s15  ;;  %s1263_s21 = int_to_ptr.hbm [resolvable:$true] %s1262_s21 }
 0x35f   : > { %s1242_s11 = scalar_lea.sflag [#allocation4], %s2258_s24  ;;  %s1933_s6 = sshra.s32 %s1263_s21, 4  ;;  %s1934_s6 = int_to_ptr.hbm [resolvable:$true] %s1933_s6 }
 0x360   : > { %s1935_s1 = scalar_lea.hbm %s1934_s6, 16  ;;  %s1939_s27 = scalar_lea.hbm %s2383_s8, 32 }
 0x361   : > { %p1936_p13 = scmp.ne.s32.totalorder %s1934_s6, %s1935_s1  ;;  %p1940_p12 = scmp.lt.s32.totalorder %s1934_s6, %s2383_s8 }
 0x362   : > { %p1941_p0 = scmp.lt.s32.totalorder %s1939_s27, %s1935_s1 }
 0x363   : > { %p1937_p8 = pnand %p1936_p13, %p2145_p3 }
 0x364   : > { %p1942_p4 = por %p1941_p0, %p1940_p12 }
 0x365   : > { %p1938_p9 = pneg %p1937_p8 }
 0x367   : > { %p1943_p5 = pnand %p1942_p4, %p1938_p9 }
 0x3d4   : > { %v1196_v49 = vpop.f32.mrf.mxu1 }
 0x3d6   : > { %v1176_v50 = vpop.f32.mrf.mxu0 }
 0x3d7   : > { %v1197_v51 = vadd.f32 %v1196_v49, %v1176_v50 }
 0x3d9   : > { %1239 = vst [vmem:[%s536_s30] sm:$0xff] %v1197_v51 }
 0x3da   : > { %v1236_v52 = vpop.f32.mrf.mxu3 }
 0x3dc   : > { %v1216_v53 = vpop.f32.mrf.mxu2 }
 0x3dd   : > { %v1237_v54 = vadd.f32 %v1236_v52, %v1216_v53 }
 0x3df   : > { %1240 = vst [vmem:[%s536_s30 + $0x8] sm:$0xff] %v1237_v54 }
 0x3e0   : > { %1946 = shalt.err (!%p1943_p5)
}
 0x3e1   : > { %1556 = dma.vmem_to_hbm [thread:$0]  (%p2145_p3), %s1261_s15, 256, %s1263_s21, %s1242_s11  }
 0x3e2 PF: > { %s2422_s24 = sld [smem:[#allocation26_spill]]  ;;  %p2424_p7 = scmp.ge.s32.totalorder %s2005_s12, 2 }
 0x3e4   : > { %p1587_p1 = pnand %p2424_p7, %p2100_p6 }
 0x3e6   : > { %p1588_p11 = pneg %p1587_p1 }
 0x3e8   : > { %s1291_s4 = sand.u32 1, %s2422_s24  }
 0x3e9   : > { %s1292_s16 = scalar_lea.sflag [#allocation4], %s1291_s4 }
 0x3ea   : > { %1984 = dma.done.wait (%p1588_p11), %s1292_s16, 256  }
 0x3eb   : > { %1986 = vsyncadd (%p1588_p11), %s1292_s16, 4294967040  ;;  %s1302_s13 = scalar_lea.sflag [#allocation18], %s1291_s4 }
 0x3ec   : > { %1988 = dma.done.wait (%p1588_p11), %s1302_s13, 256  }
 0x3ed   : > { %1990 = vsyncadd (%p1588_p11), %s1302_s13, 4294967040  ;;  %s2425_s12 = sld [smem:[#allocation29_spill]]  ;;  %s2428_s30 = smov %s1997_s10 }
 0x3ee   : > { %s2426_s25 = sld [smem:[#allocation27_spill]] }
 0x3ef   : > { %s2427_s11 = sld [smem:[#allocation30_spill]] }
 0x3f3   : > { %p34_p3 = scmp.ge.s32.totalorder %s2425_s12, 4  }
 0x3f4   : > { %s2429_s10 = smov %s2426_s25 }
 0x3f5   :  { %36 = sbr.rel (!%p34_p3) target bundleno = 19 (0x13), region = 168 }
 0x3fa   :  { %1308 = vsyncpa [#allocation3], 1 }
 0x3fb   :  { %1310 = vsyncpa [#allocation3 + $0x1], 1 }
 0x3fc   :  { %1311 = vsyncpa [#allocation6], 1 }
 0x3fd   :  { %1313 = vsyncpa [#allocation6 + $0x1], 1 }
 0x3fe   :  { %1314 = vsyncpa [#allocation9], 1 }
 0x3ff   :  { %1315 = vsyncpa [#allocation12], 1 }
 0x400   :  { %1316 = vsyncpa [#allocation15], 1 }
 0x401   :  { %1318 = vsyncpa [#allocation15 + $0x1], 1 }
 0x402   :  { %1319 = vsyncpa [#allocation4], 1 }
 0x403   :  { %1321 = vsyncpa [#allocation4 + $0x1], 1 }
 0x404   :  { %1322 = vsyncpa [#allocation18], 1 }
 0x405   :  { %1324 = vsyncpa [#allocation18 + $0x1], 1 }

</bundles_post_ra>
